<compile_context>
chip_gen: v7x
topology: tpu7x:2x2x1
jax: 0.10.0
libtpu: 0.0.40
codegen_flags: <defaults>
</compile_context>

<pallas_src>
import functools

import jax
import jax.numpy as jnp
from jax.experimental import pallas as pl
from jax.experimental.pallas import tpu as pltpu


def _coordatt_kernel(x_ref, p_ref, q_ref, r_ref, t_ref,
                     w1_ref, s1_ref, b1_ref,
                     wh_ref, bh_ref, ww_ref, bw_ref,
                     o_ref, *, H, W):
    # x block: (1, C, H*W) -> (C, S), kept in its native dtype (f32 / bf16).
    x2d = x_ref[0]
    dt = x2d.dtype
    hi = jax.lax.Precision.HIGHEST

    # AdaptiveAvgPool2d((None,1)) / ((1,None)) via the MXU: P (S,H) and Q (S,W)
    # are 0/1 selection matrices (exact in any dtype), accumulate in f32, then
    # scale.  No full-block f32 copy is ever materialized.
    x_h = jnp.dot(x2d, p_ref[...], preferred_element_type=jnp.float32,
                  precision=hi) * (1.0 / W)                        # (C, H)
    x_w = jnp.dot(x2d, q_ref[...], preferred_element_type=jnp.float32,
                  precision=hi) * (1.0 / H)                        # (C, W)

    def branch(pooled, w_out, b_out):
        # conv1 (1x1) == channel matmul, then folded BN scale/shift.
        y = jnp.dot(w1_ref[...], pooled, preferred_element_type=jnp.float32,
                    precision=hi)                                  # (mip, S_ax)
        y = y * s1_ref[...] + b1_ref[...]
        # h_swish(y) = y * relu6(y + 3) / 6
        y = y * jnp.clip(y + 3.0, 0.0, 6.0) * (1.0 / 6.0)
        # conv_h / conv_w (1x1) + sigmoid.
        a = jnp.dot(w_out, y, preferred_element_type=jnp.float32,
                    precision=hi) + b_out
        return jax.nn.sigmoid(a)                                   # (oup, S_ax)

    a_h = branch(x_h, wh_ref[...], bh_ref[...])                    # (C, H) f32
    a_w = branch(x_w, ww_ref[...], bw_ref[...])                    # (C, W) f32

    # Expand the gates back to (C, S) with the 0/1 broadcast matrices R (H,S)
    # and T (W,S) on the MXU, cast each plane to x.dtype, and fuse the apply:
    # out[c, h*W+w] = x * a_h[c,h] * a_w[c,w].
    gh = jnp.dot(a_h.astype(dt), r_ref[...],
                 preferred_element_type=jnp.float32, precision=hi).astype(dt)
    gw = jnp.dot(a_w.astype(dt), t_ref[...],
                 preferred_element_type=jnp.float32, precision=hi).astype(dt)
    o_ref[0] = (x2d * gh) * gw


def coord_att_pallas(x_nchw, params):
    """Run CoordAtt on an NCHW input (f32 or bf16). Returns NCHW output."""
    N, C, H, W = x_nchw.shape
    (w1, s1, b1, wh, bh, ww, bw) = params
    mip = w1.shape[0]
    oup = wh.shape[0]
    # The gate multiplies the identity feature map, so oup must match inp.
    assert oup == C, "CoordAtt applies the gate to the identity: need oup == inp"
    S = H * W
    dt = x_nchw.dtype
    itemsize = jnp.dtype(dt).itemsize

    # Lane-dense view of the activations (free reshape on contiguous NCHW).
    x2d = x_nchw.reshape(N, C, S)

    # Constant 0/1 pooling / broadcast matrices (exact in any dtype); built in
    # the wrapper (plain XLA) and kept resident in VMEM (constant index_map).
    s_idx = jnp.arange(S)
    P = (s_idx[:, None] // W == jnp.arange(H)[None, :]).astype(dt)   # (S, H)
    Q = (s_idx[:, None] % W == jnp.arange(W)[None, :]).astype(dt)    # (S, W)
    R = P.T                                                          # (H, S)
    T = Q.T                                                          # (W, S)

    def full(shape):
        return pl.BlockSpec(shape, lambda n: (0,) * len(shape))

    # VMEM accounting: in + out blocks (double-buffered), resident constants /
    # weights, plus the two gate planes + one product as temporaries.
    block_bytes = C * S * itemsize
    const_bytes = int(P.size + Q.size + R.size + T.size) * itemsize
    weight_bytes = sum(int(a.size) * 4 for a in (w1, s1, b1, wh, bh, ww, bw))
    temp_bytes = 3 * block_bytes + (2 << 20)
    try:
        vmem_cap = pltpu.get_tpu_info().vmem_capacity_bytes
    except Exception:
        vmem_cap = 64 << 20                    # conservative (v7x) fallback

    resident = 4 * block_bytes + const_bytes + weight_bytes + temp_bytes
    if resident > int(vmem_cap * 0.85):
        # Too big to double-buffer on this chip (e.g. v7x 64 MiB): drop the big
        # block to single-buffered instead of spilling / failing to fit.
        x_spec = pl.BlockSpec((1, C, S), lambda n: (n, 0, 0),
                              pipeline_mode=pl.Buffered(1))
        o_spec = pl.BlockSpec((1, C, S), lambda n: (n, 0, 0),
                              pipeline_mode=pl.Buffered(1))
        resident = 2 * block_bytes + const_bytes + weight_bytes + temp_bytes
    else:
        x_spec = pl.BlockSpec((1, C, S), lambda n: (n, 0, 0))
        o_spec = pl.BlockSpec((1, C, S), lambda n: (n, 0, 0))
    vmem_limit = int(min(max(resident, 32 << 20), int(vmem_cap * 0.9)))

    # Advisory cost: the kernel is bandwidth-bound (2 passes over x + tiny
    # matmuls); lets XLA overlap neighbouring ops with this call.
    flops = 2 * N * (2 * C * S * (H + W)          # pool + gate-expand matmuls
                     + mip * C * (H + W)          # conv1
                     + oup * mip * (H + W)) + 4 * N * C * S
    cost = pl.CostEstimate(
        flops=int(flops),
        transcendentals=int(2 * N * oup * (H + W)),
        bytes_accessed=int(2 * N * C * S * itemsize + weight_bytes + const_bytes))

    kernel = functools.partial(_coordatt_kernel, H=H, W=W)

    out2d = pl.pallas_call(
        kernel,
        out_shape=jax.ShapeDtypeStruct((N, C, S), dt),
        grid_spec=pltpu.PrefetchScalarGridSpec(
            num_scalar_prefetch=0,
            grid=(N,),
            in_specs=[
                x_spec,                                    # x (lane-dense)
                full((S, H)), full((S, W)),                # P, Q (pooling)
                full((H, S)), full((W, S)),                # R, T (gate expand)
                full((mip, C)),                            # conv1 weight
                full((mip, 1)), full((mip, 1)),            # folded BN scale/shift
                full((oup, mip)), full((oup, 1)),          # conv_h weight/bias
                full((oup, mip)), full((oup, 1)),          # conv_w weight/bias
            ],
            out_specs=o_spec,
        ),
        compiler_params=pltpu.CompilerParams(
            dimension_semantics=("parallel",),
            vmem_limit_bytes=vmem_limit),
        cost_estimate=cost,
    )(x2d, P, Q, R, T, w1, s1, b1, wh, bh, ww, bw)

    return out2d.reshape(N, C, H, W)


def make_params(key, inp, oup, reduction=32,
                bn_gamma=None, bn_beta=None, bn_mean=None, bn_var=None,
                bn_eps=1e-5):
    """Synthetic parameters matching CoordAtt.__init__ shapes, laid out for the
    kernel.  BatchNorm stats/affine (from a trained model) can be passed and
    are folded into scale/shift; defaults are fresh-module values."""
    mip = max(8, inp // reduction)
    k = jax.random.split(key, 6)

    # conv1: torch weight (mip, inp, 1, 1) -> (mip, inp) for  w1 @ pooled
    w1 = jax.random.normal(k[0], (mip, inp), jnp.float32) * 0.1
    b1 = jax.random.normal(k[1], (mip,), jnp.float32) * 0.1

    gamma = jnp.ones((mip,), jnp.float32) if bn_gamma is None else bn_gamma
    beta = jnp.zeros((mip,), jnp.float32) if bn_beta is None else bn_beta
    mean = jnp.zeros((mip,), jnp.float32) if bn_mean is None else bn_mean
    var = jnp.ones((mip,), jnp.float32) if bn_var is None else bn_var
    scale = gamma / jnp.sqrt(var + bn_eps)                 # (mip,)
    shift = (b1 - mean) * scale + beta                     # folds conv1 bias + BN

    # conv_h / conv_w: torch weight (oup, mip, 1, 1) -> (oup, mip)
    wh = jax.random.normal(k[2], (oup, mip), jnp.float32) * 0.1
    bh = jax.random.normal(k[3], (oup,), jnp.float32) * 0.1
    ww = jax.random.normal(k[4], (oup, mip), jnp.float32) * 0.1
    bw = jax.random.normal(k[5], (oup,), jnp.float32) * 0.1

    return (w1,
            scale.reshape(mip, 1), shift.reshape(mip, 1),
            wh, bh.reshape(oup, 1),
            ww, bw.reshape(oup, 1))


def coord_att_reference(x_nchw, params):
    """Pure-JAX reference mirroring the PyTorch forward (NCHW, f32 compute)."""
    (w1, s1, b1, wh, bh, ww, bw) = params
    hi = jax.lax.Precision.HIGHEST
    x = x_nchw.astype(jnp.float32)
    x_h = jnp.mean(x, axis=3)                              # (N, C, H)
    x_w = jnp.mean(x, axis=2)                              # (N, C, W)

    def branch(pooled, wo, bo):
        y = jnp.einsum("mc,ncs->nms", w1, pooled, precision=hi) * s1[None] + b1[None]
        y = y * jnp.clip(y + 3.0, 0.0, 6.0) / 6.0
        a = jnp.einsum("om,nms->nos", wo, y, precision=hi) + bo[None]
        return jax.nn.sigmoid(a)

    a_h = branch(x_h, wh, bh)                              # (N, C, H)
    a_w = branch(x_w, ww, bw)                              # (N, C, W)
    out = x * a_h[:, :, :, None] * a_w[:, :, None, :]
    return out.astype(x_nchw.dtype)


if __name__ == "__main__":
    key = jax.random.PRNGKey(0)
    kx, kp = jax.random.split(key)

    N, C, H, W = 2, 4, 16, 16
    x = jax.random.normal(kx, (N, C, H, W), jnp.float32)
    params = make_params(kp, inp=C, oup=C, reduction=32)

    # f32 path
    out = jax.block_until_ready(coord_att_pallas(x, params))
    ref = coord_att_reference(x, params)
    assert out.shape == (N, C, H, W)
    assert jnp.allclose(out, ref, rtol=5e-3, atol=5e-4), "f32 mismatch vs reference"

    # bf16 path (half the HBM bytes; accumulation stays f32 inside the kernel).
    # The gate is rounded to bf16 before the multiply (reference rounds once at
    # the end) -> documented double-rounding, well inside the tolerance.
    x_bf16 = x.astype(jnp.bfloat16)
    out_bf16 = jax.block_until_ready(coord_att_pallas(x_bf16, params))
    ref_bf16 = coord_att_reference(x_bf16, params)
    assert out_bf16.dtype == jnp.bfloat16
    assert jnp.allclose(out_bf16.astype(jnp.float32),
                        ref_bf16.astype(jnp.float32),
                        rtol=5e-2, atol=5e-2), "bf16 mismatch vs reference"

    print("KERNEL_OK")
</pallas_src>

<mosaic_0001>
module attributes {stable_mosaic.version = 11 : i64} {
  func.func @_coordatt_kernel(%arg0: i32, %arg1: memref<1x4x256xf32, #tpu.memory_space<vmem>>, %arg2: memref<256x16xf32, #tpu.memory_space<vmem>>, %arg3: memref<256x16xf32, #tpu.memory_space<vmem>>, %arg4: memref<16x256xf32, #tpu.memory_space<vmem>>, %arg5: memref<16x256xf32, #tpu.memory_space<vmem>>, %arg6: memref<8x4xf32, #tpu.memory_space<vmem>>, %arg7: memref<8x1xf32, #tpu.memory_space<vmem>>, %arg8: memref<8x1xf32, #tpu.memory_space<vmem>>, %arg9: memref<4x8xf32, #tpu.memory_space<vmem>>, %arg10: memref<4x1xf32, #tpu.memory_space<vmem>>, %arg11: memref<4x8xf32, #tpu.memory_space<vmem>>, %arg12: memref<4x1xf32, #tpu.memory_space<vmem>>, %arg13: memref<1x4x256xf32, #tpu.memory_space<vmem>>) attributes {dimension_semantics = [#tpu.dimension_semantics<parallel>], iteration_bounds = array<i64: 2>, scalar_prefetch = 0 : i64, scratch_operands = 0 : i64, tpu.core_type = #tpu.core_type<tc>, window_params = [{transform_indices = @transform_0, window_bounds = array<i64: 1, 4, 256>}, {pipeline_mode = #tpu.pipeline_mode<synchronous>, transform_indices = @transform_1, window_bounds = array<i64: 256, 16>}, {pipeline_mode = #tpu.pipeline_mode<synchronous>, transform_indices = @transform_2, window_bounds = array<i64: 256, 16>}, {pipeline_mode = #tpu.pipeline_mode<synchronous>, transform_indices = @transform_3, window_bounds = array<i64: 16, 256>}, {pipeline_mode = #tpu.pipeline_mode<synchronous>, transform_indices = @transform_4, window_bounds = array<i64: 16, 256>}, {pipeline_mode = #tpu.pipeline_mode<synchronous>, transform_indices = @transform_5, window_bounds = array<i64: 8, 4>}, {pipeline_mode = #tpu.pipeline_mode<synchronous>, transform_indices = @transform_6, window_bounds = array<i64: 8, 1>}, {pipeline_mode = #tpu.pipeline_mode<synchronous>, transform_indices = @transform_7, window_bounds = array<i64: 8, 1>}, {pipeline_mode = #tpu.pipeline_mode<synchronous>, transform_indices = @transform_8, window_bounds = array<i64: 4, 8>}, {pipeline_mode = #tpu.pipeline_mode<synchronous>, transform_indices = @transform_9, window_bounds = array<i64: 4, 1>}, {pipeline_mode = #tpu.pipeline_mode<synchronous>, transform_indices = @transform_10, window_bounds = array<i64: 4, 8>}, {pipeline_mode = #tpu.pipeline_mode<synchronous>, transform_indices = @transform_11, window_bounds = array<i64: 4, 1>}, {transform_indices = @transform_12, window_bounds = array<i64: 1, 4, 256>}]} {
    %c0 = arith.constant 0 : index
    %c0_0 = arith.constant 0 : index
    %c0_1 = arith.constant 0 : index
    %0 = vector.load %arg1[%c0, %c0_0, %c0_1] : memref<1x4x256xf32, #tpu.memory_space<vmem>>, vector<1x4x256xf32>
    %1 = vector.shape_cast %0 : vector<1x4x256xf32> to vector<4x256xf32>
    %c0_2 = arith.constant 0 : index
    %c0_3 = arith.constant 0 : index
    %2 = vector.load %arg2[%c0_2, %c0_3] : memref<256x16xf32, #tpu.memory_space<vmem>>, vector<256x16xf32>
    %cst = arith.constant dense<0.000000e+00> : vector<4x16xf32>
    %3 = tpu.matmul %1, %2, %cst {dimension_numbers = #tpu.dot_dimension_numbers<[1], [0], [0], [1], [0, 0, 1, 1], [], []>, precision = #tpu.contract_precision<fp32>} : vector<4x256xf32>, vector<256x16xf32>, vector<4x16xf32> -> vector<4x16xf32>
    %cst_4 = arith.constant 6.250000e-02 : f32
    %4 = vector.broadcast %cst_4 : f32 to vector<4x16xf32>
    %5 = arith.mulf %3, %4 : vector<4x16xf32>
    %c0_5 = arith.constant 0 : index
    %c0_6 = arith.constant 0 : index
    %6 = vector.load %arg3[%c0_5, %c0_6] : memref<256x16xf32, #tpu.memory_space<vmem>>, vector<256x16xf32>
    %cst_7 = arith.constant dense<0.000000e+00> : vector<4x16xf32>
    %7 = tpu.matmul %1, %6, %cst_7 {dimension_numbers = #tpu.dot_dimension_numbers<[1], [0], [0], [1], [0, 0, 1, 1], [], []>, precision = #tpu.contract_precision<fp32>} : vector<4x256xf32>, vector<256x16xf32>, vector<4x16xf32> -> vector<4x16xf32>
    %cst_8 = arith.constant 6.250000e-02 : f32
    %8 = vector.broadcast %cst_8 : f32 to vector<4x16xf32>
    %9 = arith.mulf %7, %8 : vector<4x16xf32>
    %c0_9 = arith.constant 0 : index
    %c0_10 = arith.constant 0 : index
    %10 = vector.load %arg9[%c0_9, %c0_10] : memref<4x8xf32, #tpu.memory_space<vmem>>, vector<4x8xf32>
    %c0_11 = arith.constant 0 : index
    %c0_12 = arith.constant 0 : index
    %11 = vector.load %arg10[%c0_11, %c0_12] : memref<4x1xf32, #tpu.memory_space<vmem>>, vector<4x1xf32>
    %c0_13 = arith.constant 0 : index
    %c0_14 = arith.constant 0 : index
    %12 = vector.load %arg6[%c0_13, %c0_14] : memref<8x4xf32, #tpu.memory_space<vmem>>, vector<8x4xf32>
    %cst_15 = arith.constant dense<0.000000e+00> : vector<8x16xf32>
    %13 = tpu.matmul %12, %5, %cst_15 {dimension_numbers = #tpu.dot_dimension_numbers<[1], [0], [0], [1], [0, 0, 1, 1], [], []>, precision = #tpu.contract_precision<fp32>} : vector<8x4xf32>, vector<4x16xf32>, vector<8x16xf32> -> vector<8x16xf32>
    %c0_16 = arith.constant 0 : index
    %c0_17 = arith.constant 0 : index
    %14 = vector.load %arg7[%c0_16, %c0_17] : memref<8x1xf32, #tpu.memory_space<vmem>>, vector<8x1xf32>
    %15 = vector.broadcast %14 : vector<8x1xf32> to vector<8x16xf32>
    %16 = arith.mulf %13, %15 : vector<8x16xf32>
    %c0_18 = arith.constant 0 : index
    %c0_19 = arith.constant 0 : index
    %17 = vector.load %arg8[%c0_18, %c0_19] : memref<8x1xf32, #tpu.memory_space<vmem>>, vector<8x1xf32>
    %18 = vector.broadcast %17 : vector<8x1xf32> to vector<8x16xf32>
    %19 = arith.addf %16, %18 : vector<8x16xf32>
    %cst_20 = arith.constant 3.000000e+00 : f32
    %20 = vector.broadcast %cst_20 : f32 to vector<8x16xf32>
    %21 = arith.addf %19, %20 : vector<8x16xf32>
    %cst_21 = arith.constant 0.000000e+00 : f32
    %cst_22 = arith.constant 6.000000e+00 : f32
    %22 = vector.broadcast %cst_21 : f32 to vector<8x16xf32>
    %23 = arith.maximumf %22, %21 : vector<8x16xf32>
    %24 = vector.broadcast %cst_22 : f32 to vector<8x16xf32>
    %25 = arith.minimumf %24, %23 : vector<8x16xf32>
    %26 = arith.mulf %19, %25 : vector<8x16xf32>
    %cst_23 = arith.constant 0.166666672 : f32
    %27 = vector.broadcast %cst_23 : f32 to vector<8x16xf32>
    %28 = arith.mulf %26, %27 : vector<8x16xf32>
    %cst_24 = arith.constant dense<0.000000e+00> : vector<4x16xf32>
    %29 = tpu.matmul %10, %28, %cst_24 {dimension_numbers = #tpu.dot_dimension_numbers<[1], [0], [0], [1], [0, 0, 1, 1], [], []>, precision = #tpu.contract_precision<fp32>} : vector<4x8xf32>, vector<8x16xf32>, vector<4x16xf32> -> vector<4x16xf32>
    %30 = vector.broadcast %11 : vector<4x1xf32> to vector<4x16xf32>
    %31 = arith.addf %29, %30 : vector<4x16xf32>
    %32 = arith.negf %31 : vector<4x16xf32>
    %33 = math.exp %32 : vector<4x16xf32>
    %cst_25 = arith.constant 1.000000e+00 : f32
    %34 = vector.broadcast %cst_25 : f32 to vector<4x16xf32>
    %35 = arith.addf %34, %33 : vector<4x16xf32>
    %36 = arith.divf %34, %35 : vector<4x16xf32>
    %c0_26 = arith.constant 0 : index
    %c0_27 = arith.constant 0 : index
    %37 = vector.load %arg11[%c0_26, %c0_27] : memref<4x8xf32, #tpu.memory_space<vmem>>, vector<4x8xf32>
    %c0_28 = arith.constant 0 : index
    %c0_29 = arith.constant 0 : index
    %38 = vector.load %arg12[%c0_28, %c0_29] : memref<4x1xf32, #tpu.memory_space<vmem>>, vector<4x1xf32>
    %c0_30 = arith.constant 0 : index
    %c0_31 = arith.constant 0 : index
    %39 = vector.load %arg6[%c0_30, %c0_31] : memref<8x4xf32, #tpu.memory_space<vmem>>, vector<8x4xf32>
    %cst_32 = arith.constant dense<0.000000e+00> : vector<8x16xf32>
    %40 = tpu.matmul %39, %9, %cst_32 {dimension_numbers = #tpu.dot_dimension_numbers<[1], [0], [0], [1], [0, 0, 1, 1], [], []>, precision = #tpu.contract_precision<fp32>} : vector<8x4xf32>, vector<4x16xf32>, vector<8x16xf32> -> vector<8x16xf32>
    %c0_33 = arith.constant 0 : index
    %c0_34 = arith.constant 0 : index
    %41 = vector.load %arg7[%c0_33, %c0_34] : memref<8x1xf32, #tpu.memory_space<vmem>>, vector<8x1xf32>
    %42 = vector.broadcast %41 : vector<8x1xf32> to vector<8x16xf32>
    %43 = arith.mulf %40, %42 : vector<8x16xf32>
    %c0_35 = arith.constant 0 : index
    %c0_36 = arith.constant 0 : index
    %44 = vector.load %arg8[%c0_35, %c0_36] : memref<8x1xf32, #tpu.memory_space<vmem>>, vector<8x1xf32>
    %45 = vector.broadcast %44 : vector<8x1xf32> to vector<8x16xf32>
    %46 = arith.addf %43, %45 : vector<8x16xf32>
    %cst_37 = arith.constant 3.000000e+00 : f32
    %47 = vector.broadcast %cst_37 : f32 to vector<8x16xf32>
    %48 = arith.addf %46, %47 : vector<8x16xf32>
    %cst_38 = arith.constant 0.000000e+00 : f32
    %cst_39 = arith.constant 6.000000e+00 : f32
    %49 = vector.broadcast %cst_38 : f32 to vector<8x16xf32>
    %50 = arith.maximumf %49, %48 : vector<8x16xf32>
    %51 = vector.broadcast %cst_39 : f32 to vector<8x16xf32>
    %52 = arith.minimumf %51, %50 : vector<8x16xf32>
    %53 = arith.mulf %46, %52 : vector<8x16xf32>
    %cst_40 = arith.constant 0.166666672 : f32
    %54 = vector.broadcast %cst_40 : f32 to vector<8x16xf32>
    %55 = arith.mulf %53, %54 : vector<8x16xf32>
    %cst_41 = arith.constant dense<0.000000e+00> : vector<4x16xf32>
    %56 = tpu.matmul %37, %55, %cst_41 {dimension_numbers = #tpu.dot_dimension_numbers<[1], [0], [0], [1], [0, 0, 1, 1], [], []>, precision = #tpu.contract_precision<fp32>} : vector<4x8xf32>, vector<8x16xf32>, vector<4x16xf32> -> vector<4x16xf32>
    %57 = vector.broadcast %38 : vector<4x1xf32> to vector<4x16xf32>
    %58 = arith.addf %56, %57 : vector<4x16xf32>
    %59 = arith.negf %58 : vector<4x16xf32>
    %60 = math.exp %59 : vector<4x16xf32>
    %cst_42 = arith.constant 1.000000e+00 : f32
    %61 = vector.broadcast %cst_42 : f32 to vector<4x16xf32>
    %62 = arith.addf %61, %60 : vector<4x16xf32>
    %63 = arith.divf %61, %62 : vector<4x16xf32>
    %c0_43 = arith.constant 0 : index
    %c0_44 = arith.constant 0 : index
    %64 = vector.load %arg4[%c0_43, %c0_44] : memref<16x256xf32, #tpu.memory_space<vmem>>, vector<16x256xf32>
    %cst_45 = arith.constant dense<0.000000e+00> : vector<4x256xf32>
    %65 = tpu.matmul %36, %64, %cst_45 {dimension_numbers = #tpu.dot_dimension_numbers<[1], [0], [0], [1], [0, 0, 1, 1], [], []>, precision = #tpu.contract_precision<fp32>} : vector<4x16xf32>, vector<16x256xf32>, vector<4x256xf32> -> vector<4x256xf32>
    %c0_46 = arith.constant 0 : index
    %c0_47 = arith.constant 0 : index
    %66 = vector.load %arg5[%c0_46, %c0_47] : memref<16x256xf32, #tpu.memory_space<vmem>>, vector<16x256xf32>
    %cst_48 = arith.constant dense<0.000000e+00> : vector<4x256xf32>
    %67 = tpu.matmul %63, %66, %cst_48 {dimension_numbers = #tpu.dot_dimension_numbers<[1], [0], [0], [1], [0, 0, 1, 1], [], []>, precision = #tpu.contract_precision<fp32>} : vector<4x16xf32>, vector<16x256xf32>, vector<4x256xf32> -> vector<4x256xf32>
    %68 = arith.mulf %1, %65 : vector<4x256xf32>
    %69 = arith.mulf %68, %67 : vector<4x256xf32>
    %c0_49 = arith.constant 0 : index
    %c0_50 = arith.constant 0 : index
    %c0_51 = arith.constant 0 : index
    %70 = vector.load %arg13[%c0_49, %c0_50, %c0_51] : memref<1x4x256xf32, #tpu.memory_space<vmem>>, vector<1x4x256xf32>
    %71 = vector.shape_cast %70 : vector<1x4x256xf32> to vector<4x256xf32>
    %72 = vector.shape_cast %69 : vector<4x256xf32> to vector<1x4x256xf32>
    tpu.vector_store %arg13[%c0_49, %c0_50, %c0_51], %72 {strides = array<i32>} : memref<1x4x256xf32, #tpu.memory_space<vmem>>, vector<1x4x256xf32>,
    return
  }
  func.func @transform_0(%arg0: i32) -> (i32, i32, i32) {
    %c0_i32 = arith.constant 0 : i32
    %c0_i32_0 = arith.constant 0 : i32
    %c0_i32_1 = arith.constant 0 : i32
    return %arg0, %c0_i32, %c0_i32_0 : i32, i32, i32
  }
  func.func @transform_1(%arg0: i32) -> (i32, i32) {
    %c0_i32 = arith.constant 0 : i32
    %c0_i32_0 = arith.constant 0 : i32
    %c0_i32_1 = arith.constant 0 : i32
    return %c0_i32, %c0_i32_0 : i32, i32
  }
  func.func @transform_2(%arg0: i32) -> (i32, i32) {
    %c0_i32 = arith.constant 0 : i32
    %c0_i32_0 = arith.constant 0 : i32
    %c0_i32_1 = arith.constant 0 : i32
    return %c0_i32, %c0_i32_0 : i32, i32
  }
  func.func @transform_3(%arg0: i32) -> (i32, i32) {
    %c0_i32 = arith.constant 0 : i32
    %c0_i32_0 = arith.constant 0 : i32
    %c0_i32_1 = arith.constant 0 : i32
    return %c0_i32, %c0_i32_0 : i32, i32
  }
  func.func @transform_4(%arg0: i32) -> (i32, i32) {
    %c0_i32 = arith.constant 0 : i32
    %c0_i32_0 = arith.constant 0 : i32
    %c0_i32_1 = arith.constant 0 : i32
    return %c0_i32, %c0_i32_0 : i32, i32
  }
  func.func @transform_5(%arg0: i32) -> (i32, i32) {
    %c0_i32 = arith.constant 0 : i32
    %c0_i32_0 = arith.constant 0 : i32
    %c0_i32_1 = arith.constant 0 : i32
    return %c0_i32, %c0_i32_0 : i32, i32
  }
  func.func @transform_6(%arg0: i32) -> (i32, i32) {
    %c0_i32 = arith.constant 0 : i32
    %c0_i32_0 = arith.constant 0 : i32
    %c0_i32_1 = arith.constant 0 : i32
    return %c0_i32, %c0_i32_0 : i32, i32
  }
  func.func @transform_7(%arg0: i32) -> (i32, i32) {
    %c0_i32 = arith.constant 0 : i32
    %c0_i32_0 = arith.constant 0 : i32
    %c0_i32_1 = arith.constant 0 : i32
    return %c0_i32, %c0_i32_0 : i32, i32
  }
  func.func @transform_8(%arg0: i32) -> (i32, i32) {
    %c0_i32 = arith.constant 0 : i32
    %c0_i32_0 = arith.constant 0 : i32
    %c0_i32_1 = arith.constant 0 : i32
    return %c0_i32, %c0_i32_0 : i32, i32
  }
  func.func @transform_9(%arg0: i32) -> (i32, i32) {
    %c0_i32 = arith.constant 0 : i32
    %c0_i32_0 = arith.constant 0 : i32
    %c0_i32_1 = arith.constant 0 : i32
    return %c0_i32, %c0_i32_0 : i32, i32
  }
  func.func @transform_10(%arg0: i32) -> (i32, i32) {
    %c0_i32 = arith.constant 0 : i32
    %c0_i32_0 = arith.constant 0 : i32
    %c0_i32_1 = arith.constant 0 : i32
    return %c0_i32, %c0_i32_0 : i32, i32
  }
  func.func @transform_11(%arg0: i32) -> (i32, i32) {
    %c0_i32 = arith.constant 0 : i32
    %c0_i32_0 = arith.constant 0 : i32
    %c0_i32_1 = arith.constant 0 : i32
    return %c0_i32, %c0_i32_0 : i32, i32
  }
  func.func @transform_12(%arg0: i32) -> (i32, i32, i32) {
    %c0_i32 = arith.constant 0 : i32
    %c0_i32_0 = arith.constant 0 : i32
    %c0_i32_1 = arith.constant 0 : i32
    return %arg0, %c0_i32, %c0_i32_0 : i32, i32, i32
  }
}

</mosaic_0001>

<bundles_post_ra>
// kernel: tpu_custom_call.1
= control target key start
LH: loop header
LB: loop body
LE: loop exit
PB: predicated region body
PF: predicated region fallthrough
CT: control target
= control target key end

     0   :  { %s7826_s0 = inlined_call_operand.vmem [shape: f32[2,4,256], index: 0, kind: input, shape index: {}]   ;;  %s7827_s1 = inlined_call_operand.vmem [shape: f32[256,16], index: 1, kind: input, shape index: {}]   ;;  %s7828_s2 = inlined_call_operand.vmem [shape: f32[256,16], index: 2, kind: input, shape index: {}]   ;;  %s7829_s3 = inlined_call_operand.vmem [shape: f32[16,256], index: 3, kind: input, shape index: {}]   ;;  %s7830_s4 = inlined_call_operand.vmem [shape: f32[16,256], index: 4, kind: input, shape index: {}]   ;;  %s7831_s5 = inlined_call_operand.vmem [shape: f32[8,4], index: 5, kind: input, shape index: {}]   ;;  %s7832_s6 = inlined_call_operand.vmem [shape: f32[8,1], index: 6, kind: input, shape index: {}]   ;;  %s7833_s7 = inlined_call_operand.vmem [shape: f32[8,1], index: 7, kind: input, shape index: {}]   ;;  %s7834_s8 = inlined_call_operand.vmem [shape: f32[4,8], index: 8, kind: input, shape index: {}]   ;;  %s7835_s9 = inlined_call_operand.vmem [shape: f32[4,1], index: 9, kind: input, shape index: {}]   ;;  %s7836_s10 = inlined_call_operand.vmem [shape: f32[4,8], index: 10, kind: input, shape index: {}]   ;;  %s7837_s11 = inlined_call_operand.vmem [shape: f32[4,1], index: 11, kind: input, shape index: {}]   ;;  %s7838_s12 = inlined_call_operand.hbm [shape: f32[2,4,256], index: 12, kind: output, shape index: {}]  }
   0x1   :  { %7927 = sst [smem:[#allocation23_spill]] %s7826_s0 }
   0x2   :  { %17 = vsyncpa [#allocation3], 0 }
   0x3   :  { %19 = vsyncpa [#allocation3 + $0x1], 0  ;;  %s6428_s21 = smov 0   ;;  %s6430_s22 = smov 0  }
   0x4   :  { %s6432_s23 = smov 0   ;;  %s6434_s24 = smov 0  }
   0x5 LB: > { %s6449_s25 = sadd.s32 4294967295, %s6357_s24   ;;  %s5143_s26 = sadd.s32 4294967294, %s6357_s24   ;;  %s6357_s24 = sphi %s6434_s24, %s8062_s24   ;;  %s6353_s23 = sphi %s6432_s23, %s8061_s23   ;;  %s6349_s22 = sphi %s6430_s22, %s8060_s22   ;;  %s6345_s21 = sphi %s6428_s21, %s8059_s21  }
   0x6   : > { %s6453_s27 = sadd.s32 1, %s6357_s24   ;;  %s289_s28 = sadd.s32 1, %s6353_s23 }
   0x7   : > { %s286_s29 = ssub.s32 %s6357_s24, %s6453_s27  ;;  %p299_p0 = scmp.ne.s32.totalorder %s6353_s23, %s6349_s22 }
   0x8   : > { %p287_p1 = scmp.eq.s32.totalorder %s286_s29, 0  ;;  %p300_p2 = scmp.eq.s32.totalorder %s6449_s25, 1 }
   0x9   : > { %p305_p3 = scmp.ne.s32.totalorder %s6349_s22, %s6345_s21  ;;  %p306_p4 = scmp.eq.s32.totalorder %s5143_s26, 1 }
   0xa   : > { %s6464_s30 = scalar_select %p287_p1, %s6353_s23, %s289_s28  }
   0xb   : > { %p6466_p5 = por %p300_p2, %p299_p0  ;;  %p6470_p6 = por %p306_p4, %p305_p3 }
   0xc   : > { %7928 = sst [smem:[#allocation5_spill]] %s6464_s30  ;;  %p5146_p7 = scmp.ge.s32.totalorder %s6357_s24, 1 }
   0xd   : > { %p365_p8 = scmp.lt.s32.totalorder %s6357_s24, 3 }
   0xf   : > { %p366_p9 = pnand %p5146_p7, %p365_p8 }
  0x11   : > { %369 = sbr.rel (%p366_p9) target bundleno = 1298 (0x512), region = 68 }
  0x18   : > { %v429_v0 = vld [vmem:[%s7827_s1 + $0x80] sm:$0xff]  ;;  %v430_v1 = vld [vmem:[%s7827_s1 + $0x88] sm:$0xff]  ;;  %v431_v7 = vld [vmem:[%s7827_s1 + $0x90] sm:$0xff]  ;;  %p407_p10 = scmp.lt.s32.totalorder %s6449_s25, 1  ;;  %s7933_s0 = sld [smem:[#allocation23_spill]]  ;;  %vm6360_vm0 = vmmov 0  }
  0x19   : > { %v413_v2 = vld [vmem:[%s7827_s1] sm:$0xff]  ;;  %v497_v3 = vand.u32 4294901760, %v429_v0  ;;  %v500_v4 = vand.u32 4294901760, %v430_v1  ;;  %v414_v5 = vld [vmem:[%s7827_s1 + $0x8] sm:$0xff]  ;;  %v432_v8 = vld [vmem:[%s7827_s1 + $0x98] sm:$0xff]  ;;  %v503_v10 = vand.u32 4294901760, %v431_v7 }
  0x1a   : > { %v449_v6 = vand.u32 4294901760, %v413_v2  ;;  %v452_v9 = vand.u32 4294901760, %v414_v5  ;;  %v506_v11 = vand.u32 4294901760, %v432_v8  ;;  %v415_v12 = vld [vmem:[%s7827_s1 + $0x10] sm:$0xff]  ;;  %v416_v13 = vld [vmem:[%s7827_s1 + $0x18] sm:$0xff]  ;;  %v433_v18 = vld [vmem:[%s7827_s1 + $0xa0] sm:$0xff] }
  0x1b   : > { %v6500_v14 = vpack.c.bf16 %v500_v4, %v497_v3  ;;  %v455_v16 = vand.u32 4294901760, %v415_v12  ;;  %v458_v17 = vand.u32 4294901760, %v416_v13  ;;  %v434_v19 = vld [vmem:[%s7827_s1 + $0xa8] sm:$0xff]  ;;  %v417_v23 = vld [vmem:[%s7827_s1 + $0x20] sm:$0xff]  ;;  %v6523_v25 = vsub.f32 %v431_v7, %v503_v10  ;;  %v435_v37 = vld [vmem:[%s7827_s1 + $0xb0] sm:$0xff]  ;;  %s6700_s19 = scalar_select %p407_p10, %s6449_s25, 1 }
  0x1c   : > { %v6502_v15 = vsub.f32 %v413_v2, %v449_v6  ;;  %v6510_v20 = vpack.c.bf16 %v452_v9, %v449_v6  ;;  %v6512_v21 = vsub.f32 %v414_v5, %v452_v9  ;;  %v6514_v22 = vpack.c.bf16 %v506_v11, %v503_v10  ;;  %v418_v24 = vld [vmem:[%s7827_s1 + $0x28] sm:$0xff]  ;;  %v436_v42 = vld [vmem:[%s7827_s1 + $0xb8] sm:$0xff]  ;;  %v419_v55 = vld [vmem:[%s7827_s1 + $0x30] sm:$0xff]  ;;  %s404_s18 = sand.u32 1, %s6349_s22   ;;  %s5158_s20 = sshll.u32 %s6449_s25, 7 }
  0x1d   : > { %5748 = vmatprep.subr.bf16.mxu0 %v6500_v14  ;;  %v6525_v26 = vsub.f32 %v432_v8, %v506_v11  ;;  %v6527_v27 = vpack.c.bf16 %v458_v17, %v455_v16  ;;  %v6529_v28 = vsub.f32 %v415_v12, %v455_v16  ;;  %v509_v29 = vand.u32 4294901760, %v433_v18  ;;  %v420_v56 = vld [vmem:[%s7827_s1 + $0x38] sm:$0xff]  ;;  %v437_v5 = vld [vmem:[%s7827_s1 + $0xc0] sm:$0xff]  ;;  %v438_v6 = vld [vmem:[%s7827_s1 + $0xc8] sm:$0xff]  ;;  %s5157_s16 = sshll.u32 %s6700_s19, 3  ;;  %s5147_s19 = sshll.u32 %s404_s18, 3 }
  0x1e   : > { %5750 = vmatpush3.bf16.msra.mxu0 %v6510_v20  ;;  %v512_v30 = vand.u32 4294901760, %v434_v19  ;;  %v6532_v31 = vsub.f32 %v429_v0, %v497_v3  ;;  %v6534_v32 = vsub.f32 %v430_v1, %v500_v4  ;;  %v461_v33 = vand.u32 4294901760, %v417_v23  ;;  %v421_v11 = vld [vmem:[%s7827_s1 + $0x40] sm:$0xff]  ;;  %s6757_s28 = scalar_lea.vmem %s7933_s0, %s5157_s16  ;;  %s406_s30 = scalar_lea.vmem [#allocation2], %s5147_s19 }
  0x1f   : > { %5752 = vmatprep.subr.bf16.mxu0 %v6514_v22  ;;  %v464_v34 = vand.u32 4294901760, %v418_v24  ;;  %v7856_v35 = vand.u32 4294901760, %v6502_v15  ;;  %v7855_v36 = vand.u32 4294901760, %v6512_v21  ;;  %v6542_v38 = vsub.f32 %v416_v13, %v458_v17  ;;  %s5084_s26 = sshll.u32 %s406_s30, 4  ;;  %s7784_s16 = scalar_lea.hbm %s7838_s12, %s5158_s20  ;;  %s7786_s26 = int_to_ptr.vmem [resolvable:$true] %s5084_s26 }
  0x20   : > { %v6544_v39 = vpack.c.bf16 %v512_v30, %v509_v29  ;;  %v6546_v40 = vsub.f32 %v433_v18, %v509_v29  ;;  %v7858_v41 = vand.u32 4294901760, %v6532_v31  ;;  %v6552_v43 = vsub.f32 %v434_v19, %v512_v30  ;;  %v422_v29 = vld [vmem:[%s7827_s1 + $0x48] sm:$0xff]  ;;  %s5070_s17 = scalar_lea.sflag [#allocation3], %s404_s18  ;;  %s6295_s0 = scalar_lea.vmem %s7786_s26, 128 }
  0x21   : > { %v7857_v44 = vand.u32 4294901760, %v6534_v32  ;;  %v6555_v45 = vpack.c.bf16 %v464_v34, %v461_v33  ;;  %v6557_v46 = vsub.f32 %v417_v23, %v461_v33  ;;  %v564_v48 = vsub.f32 %v6502_v15, %v7856_v35  ;;  %p6296_p11 = scmp.ne.s32.totalorder %s7786_s26, %s6295_s0  ;;  %s6362_s25 = smov [#allocation2]  }
  0x22   : > { %5754 = vmatpush3.bf16.msra.mxu0 %v6527_v27  ;;  %v676_v47 = vsub.f32 %v6532_v31, %v7858_v41  ;;  %v571_v49 = vsub.f32 %v6512_v21, %v7855_v36  ;;  %v515_v50 = vand.u32 4294901760, %v435_v37  ;;  %v518_v52 = vand.u32 4294901760, %v436_v42  ;;  %v412_v41 = vld [vmem:[%s6757_s28] sm:$0xff] }
  0x23   : > { %5756 = vmatprep.subr.bf16.mxu0 %v6544_v39  ;;  %v683_v51 = vsub.f32 %v6534_v32, %v7857_v44  ;;  %v7854_v53 = vand.u32 4294901760, %v6523_v25  ;;  %v7851_v54 = vand.u32 4294901760, %v6525_v26  ;;  %v6581_v58 = vsub.f32 %v418_v24, %v464_v34  ;;  %p6297_p12 = pnand %p6296_p11, %p6466_p5 }
  0x24   : > { %v677_v57 = vand.u32 4294901760, %v676_v47  ;;  %v565_v59 = vand.u32 4294901760, %v564_v48  ;;  %v572_v60 = vand.u32 4294901760, %v571_v49  ;;  %v6583_v62 = vpack.c.bf16 %v518_v52, %v515_v50 }
  0x25   : > { %v684_v61 = vand.u32 4294901760, %v683_v51  ;;  %v6585_v63 = vsub.f32 %v435_v37, %v515_v50  ;;  %v690_v0 = vsub.f32 %v6523_v25, %v7854_v53  ;;  %v697_v2 = vsub.f32 %v6525_v26, %v7851_v54  ;;  %p6298_p13 = pneg %p6297_p12 }
  0x26   : > { %5758 = vmatpush3.bf16.msra.mxu0 %v6555_v45  ;;  %v5781_v1 = vpack.c.bf16 %v572_v60, %v565_v59  ;;  %v467_v3 = vand.u32 4294901760, %v419_v55  ;;  %v470_v4 = vand.u32 4294901760, %v420_v56  ;;  %v7850_v9 = vand.u32 4294901760, %v6529_v28 }
  0x27   : > { %v5779_v7 = vpack.c.bf16 %v684_v61, %v677_v57  ;;  %5760 = vmatprep.subr.bf16.mxu0 %v6583_v62  ;;  %v691_v8 = vand.u32 4294901760, %v690_v0  ;;  %v7847_v10 = vand.u32 4294901760, %v6542_v38  ;;  %v6606_v12 = vsub.f32 %v436_v42, %v518_v52  ;;  %v440_v57 = vld [vmem:[%s7827_s1 + $0xd8] sm:$0xff] }
  0x28   : > { %v698_v13 = vand.u32 4294901760, %v697_v2  ;;  %v6608_v16 = vpack.c.bf16 %v470_v4, %v467_v3  ;;  %v6610_v17 = vsub.f32 %v419_v55, %v467_v3  ;;  %v578_v18 = vsub.f32 %v6529_v28, %v7850_v9 }
  0x29   : > { %5780 = vmatprep.subr.bf16.mxu1 %v5779_v7  ;;  %v585_v19 = vsub.f32 %v6542_v38, %v7847_v10  ;;  %v521_v23 = vand.u32 4294901760, %v437_v5  ;;  %v524_v24 = vand.u32 4294901760, %v438_v6  ;;  %v7846_v33 = vand.u32 4294901760, %v6546_v40 }
  0x2a   : > { %5782 = vmatpush3.bf16.msra.mxu1 %v5781_v1  ;;  %v5783_v30 = vpack.c.bf16 %v698_v13, %v691_v8  ;;  %5762 = vmatpush3.bf16.msra.mxu0 %v6608_v16  ;;  %v7844_v34 = vand.u32 4294901760, %v6552_v43  ;;  %v473_v37 = vand.u32 4294901760, %v421_v11  ;;  %v6624_v42 = vsub.f32 %v420_v56, %v470_v4  ;;  %v439_v56 = vld [vmem:[%s7827_s1 + $0xd0] sm:$0xff] }
  0x2b   : > { %v579_v47 = vand.u32 4294901760, %v578_v18  ;;  %v586_v48 = vand.u32 4294901760, %v585_v19  ;;  %v6626_v49 = vpack.c.bf16 %v524_v24, %v521_v23  ;;  %v6628_v50 = vsub.f32 %v437_v5, %v521_v23  ;;  %v423_v1 = vld [vmem:[%s7827_s1 + $0x50] sm:$0xff]  ;;  %v424_v18 = vld [vmem:[%s7827_s1 + $0x58] sm:$0xff] }
  0x2c   : > { %5784 = vmatprep.subr.bf16.mxu1 %v5783_v30  ;;  %v704_v51 = vsub.f32 %v6546_v40, %v7846_v33  ;;  %v711_v52 = vsub.f32 %v6552_v43, %v7844_v34  ;;  %v476_v55 = vand.u32 4294901760, %v422_v29  ;;  %v6643_v60 = vsub.f32 %v438_v6, %v524_v24 }
  0x2d   : > { %v5785_v59 = vpack.c.bf16 %v586_v48, %v579_v47  ;;  %5764 = vmatprep.subr.bf16.mxu0 %v6626_v49  ;;  %v7843_v61 = vand.u32 4294901760, %v6557_v46  ;;  %v7841_v0 = vand.u32 4294901760, %v6581_v58  ;;  %v6652_v5 = vsub.f32 %v421_v11, %v473_v37 }
  0x2e   : > { %v705_v2 = vand.u32 4294901760, %v704_v51  ;;  %v712_v3 = vand.u32 4294901760, %v711_v52  ;;  %v6650_v4 = vpack.c.bf16 %v476_v55, %v473_v37  ;;  %v527_v8 = vand.u32 4294901760, %v439_v56 }
  0x2f   : > { %5786 = vmatpush3.bf16.msra.mxu1 %v5785_v59  ;;  %v592_v6 = vsub.f32 %v6557_v46, %v7843_v61  ;;  %v599_v7 = vsub.f32 %v6581_v58, %v7841_v0  ;;  %v530_v13 = vand.u32 4294901760, %v440_v57  ;;  %v7840_v11 = vand.u32 4294901760, %v6585_v63 }
  0x30   : > { %v5787_v19 = vpack.c.bf16 %v712_v3, %v705_v2  ;;  %5766 = vmatpush3.bf16.msra.mxu0 %v6650_v4  ;;  %v7839_v23 = vand.u32 4294901760, %v6606_v12  ;;  %v479_v24 = vand.u32 4294901760, %v423_v1  ;;  %v6667_v30 = vsub.f32 %v422_v29, %v476_v55  ;;  %v441_v29 = vld [vmem:[%s7827_s1 + $0xe0] sm:$0xff]  ;;  %v442_v55 = vld [vmem:[%s7827_s1 + $0xe8] sm:$0xff] }
  0x31   : > { %v593_v37 = vand.u32 4294901760, %v592_v6  ;;  %v600_v47 = vand.u32 4294901760, %v599_v7  ;;  %v6669_v48 = vpack.c.bf16 %v530_v13, %v527_v8  ;;  %v6671_v51 = vsub.f32 %v439_v56, %v527_v8  ;;  %v425_v8 = vld [vmem:[%s7827_s1 + $0x60] sm:$0xff] }
  0x32   : > { %5788 = vmatprep.subr.bf16.mxu1 %v5787_v19  ;;  %v718_v52 = vsub.f32 %v6585_v63, %v7840_v11  ;;  %v725_v59 = vsub.f32 %v6606_v12, %v7839_v23  ;;  %v482_v2 = vand.u32 4294901760, %v424_v18  ;;  %v6686_v3 = vsub.f32 %v440_v57, %v530_v13 }
  0x33   : > { %v5789_v56 = vpack.c.bf16 %v600_v47, %v593_v37  ;;  %5768 = vmatprep.subr.bf16.mxu0 %v6669_v48  ;;  %v7842_v6 = vand.u32 4294901760, %v6610_v17  ;;  %v7845_v7 = vand.u32 4294901760, %v6624_v42  ;;  %v6695_v0 = vsub.f32 %v423_v1, %v479_v24 }
  0x34   : > { %v719_v19 = vand.u32 4294901760, %v718_v52  ;;  %v726_v23 = vand.u32 4294901760, %v725_v59  ;;  %v6693_v11 = vpack.c.bf16 %v482_v2, %v479_v24  ;;  %v533_v37 = vand.u32 4294901760, %v441_v29  ;;  %v426_v52 = vld [vmem:[%s7827_s1 + $0x68] sm:$0xff] }
  0x35   : > { %5790 = vmatpush3.bf16.msra.mxu1 %v5789_v56  ;;  %v606_v57 = vsub.f32 %v6610_v17, %v7842_v6  ;;  %v613_v13 = vsub.f32 %v6624_v42, %v7845_v7  ;;  %v536_v47 = vand.u32 4294901760, %v442_v55  ;;  %v7849_v24 = vand.u32 4294901760, %v6628_v50 }
  0x36   : > { %v5791_v1 = vpack.c.bf16 %v726_v23, %v719_v19  ;;  %5770 = vmatpush3.bf16.msra.mxu0 %v6693_v11  ;;  %v7848_v59 = vand.u32 4294901760, %v6643_v60  ;;  %v485_v56 = vand.u32 4294901760, %v425_v8  ;;  %v6714_v6 = vsub.f32 %v424_v18, %v482_v2  ;;  %v443_v18 = vld [vmem:[%s7827_s1 + $0xf0] sm:$0xff]  ;;  %v444_v2 = vld [vmem:[%s7827_s1 + $0xf8] sm:$0xff] }
  0x37   : > { %v607_v61 = vand.u32 4294901760, %v606_v57  ;;  %v614_v34 = vand.u32 4294901760, %v613_v13  ;;  %v6716_v7 = vpack.c.bf16 %v536_v47, %v533_v37  ;;  %v6718_v33 = vsub.f32 %v441_v29, %v533_v37 }
  0x38   : > { %5792 = vmatprep.subr.bf16.mxu1 %v5791_v1  ;;  %v732_v23 = vsub.f32 %v6628_v50, %v7849_v24  ;;  %v739_v19 = vsub.f32 %v6643_v60, %v7848_v59  ;;  %v488_v10 = vand.u32 4294901760, %v426_v52  ;;  %v6734_v57 = vsub.f32 %v442_v55, %v536_v47  ;;  %v427_v1 = vld [vmem:[%s7827_s1 + $0x70] sm:$0xff] }
  0x39   : > { %7931 = vst [vmem:[#allocation6_spill] sm:$0xff] %v6716_v7  ;;  %v5793_v29 = vpack.c.bf16 %v614_v34, %v607_v61  ;;  %5772 = vmatprep.subr.bf16.mxu0 %v6716_v7  ;;  %v7853_v13 = vand.u32 4294901760, %v6652_v5  ;;  %v7852_v37 = vand.u32 4294901760, %v6667_v30  ;;  %v6743_v54 = vsub.f32 %v425_v8, %v485_v56 }
  0x3a   : > { %v733_v59 = vand.u32 4294901760, %v732_v23  ;;  %v740_v24 = vand.u32 4294901760, %v739_v19  ;;  %v6741_v9 = vpack.c.bf16 %v488_v10, %v485_v56  ;;  %v539_v55 = vand.u32 4294901760, %v443_v18  ;;  %v428_v23 = vld [vmem:[%s7827_s1 + $0x78] sm:$0xff] }
  0x3b   : > { %5794 = vmatpush3.bf16.msra.mxu1 %v5793_v29  ;;  %v620_v34 = vsub.f32 %v6652_v5, %v7853_v13  ;;  %v627_v61 = vsub.f32 %v6667_v30, %v7852_v37  ;;  %v542_v47 = vand.u32 4294901760, %v444_v2  ;;  %v7863_v56 = vand.u32 4294901760, %v6671_v51 }
  0x3c   : > { %7932 = vst [vmem:[#allocation7_spill] sm:$0xff] %v6741_v9  ;;  %v5795_v8 = vpack.c.bf16 %v740_v24, %v733_v59  ;;  %5774 = vmatpush3.bf16.msra.mxu0 %v6741_v9  ;;  %v7861_v19 = vand.u32 4294901760, %v6686_v3  ;;  %v491_v29 = vand.u32 4294901760, %v427_v1  ;;  %v6762_v37 = vsub.f32 %v426_v52, %v488_v10 }
  0x3d   : > { %v621_v13 = vand.u32 4294901760, %v620_v34  ;;  %v628_v53 = vand.u32 4294901760, %v627_v61  ;;  %v6764_v36 = vpack.c.bf16 %v542_v47, %v539_v55  ;;  %v6766_v35 = vsub.f32 %v443_v18, %v539_v55 }
  0x3e   : > { %5796 = vmatprep.subr.bf16.mxu1 %v5795_v8  ;;  %v746_v24 = vsub.f32 %v6671_v51, %v7863_v56  ;;  %v753_v59 = vsub.f32 %v6686_v3, %v7861_v19  ;;  %v494_v44 = vand.u32 4294901760, %v428_v23  ;;  %v6776_v10 = vsub.f32 %v444_v2, %v542_v47 }
  0x3f   : > { %7934 = vst [vmem:[#allocation8_spill] sm:$0xff] %v6764_v36  ;;  %v5797_v9 = vpack.c.bf16 %v628_v53, %v621_v13  ;;  %5776 = vmatprep.subr.bf16.mxu0 %v6764_v36  ;;  %v7862_v52 = vand.u32 4294901760, %v6695_v0  ;;  %v7864_v18 = vand.u32 4294901760, %v6714_v6  ;;  %v6782_v8 = vsub.f32 %v427_v1, %v491_v29 }
  0x40   : > { %v747_v34 = vand.u32 4294901760, %v746_v24  ;;  %v754_v61 = vand.u32 4294901760, %v753_v59  ;;  %v6780_v55 = vpack.c.bf16 %v494_v44, %v491_v29  ;;  %v446_v2 = vcombine.high %v412_v41, %v412_v41 }
  0x41   : > { %5798 = vmatpush3.bf16.msra.mxu1 %v5797_v9  ;;  %v634_v19 = vsub.f32 %v6695_v0, %v7862_v52  ;;  %v641_v53 = vsub.f32 %v6714_v6, %v7864_v18  ;;  %v6790_v13 = vand.u32 4294901760, %v412_v41  ;;  %v7867_v24 = vand.u32 4294901760, %v6718_v33 }
  0x42   : > { %7935 = vst [vmem:[#allocation9_spill] sm:$0xff] %v6780_v55  ;;  %v5799_v47 = vpack.c.bf16 %v754_v61, %v747_v34  ;;  %5778 = vmatpush3.bf16.msra.mxu0 %v6780_v55  ;;  %v7870_v1 = vand.u32 4294901760, %v6734_v57  ;;  %v5811_v9 = vpack.c.bf16 %v6534_v32, %v6532_v31  ;;  %v6797_v52 = vand.u32 4294901760, %v446_v2 }
  0x43   : > { %v635_v29 = vand.u32 4294901760, %v634_v19  ;;  %v642_v59 = vand.u32 4294901760, %v641_v53  ;;  %v6800_v56 = vsub.f32 %v412_v41, %v6790_v13  ;;  %v760_v34 = vsub.f32 %v6718_v33, %v7867_v24 }
  0x44   : > { %7936 = vst [vmem:[#allocation10_spill] sm:$0xff] %v6797_v52  ;;  %5800 = vmatprep.subr.bf16.mxu1 %v5799_v47  ;;  %v767_v61 = vsub.f32 %v6734_v57, %v7870_v1  ;;  %5812 = vmatprep.subr.bf16.mxu0 %v5811_v9  ;;  %v7871_v18 = vand.u32 4294901760, %v6743_v54  ;;  %v7872_v19 = vand.u32 4294901760, %v6762_v37  ;;  %v6810_v53 = vsub.f32 %v428_v23, %v494_v44 }
  0x45   : > { %7937 = vst [vmem:[#allocation11_spill] sm:$0xff] %v6800_v56  ;;  %v5801_v55 = vpack.c.bf16 %v642_v59, %v635_v29  ;;  %v6813_v41 = vsub.f32 %v446_v2, %v6797_v52  ;;  %v6816_v47 = vand.u32 4294901760, %v6800_v56  ;;  %785 = vmatprep.mubr.f32.mxu1 %v6797_v52  ;;  %v761_v24 = vand.u32 4294901760, %v760_v34 }
  0x46   : > { %v768_v36 = vand.u32 4294901760, %v767_v61  ;;  %v648_v9 = vsub.f32 %v6743_v54, %v7871_v18  ;;  %v655_v44 = vsub.f32 %v6762_v37, %v7872_v19  ;;  %v7881_v29 = vand.u32 4294901760, %v6766_v35 }
  0x47   : > { %7938 = vst [vmem:[#allocation12_spill] sm:$0xff] %v6813_v41  ;;  %7939 = vst [vmem:[#allocation13_spill] sm:$0xff] %v6816_v47  ;;  %5802 = vmatpush3.bf16.msra.mxu1 %v5801_v55  ;;  %v6826_v23 = vand.u32 4294901760, %v6813_v41  ;;  %v553_v2 = vsub.f32 %v6800_v56, %v6816_v47  ;;  %v7884_v59 = vand.u32 4294901760, %v6776_v10  ;;  %v7883_v56 = vand.u32 4294901760, %v6782_v8 }
  0x48   : > { %v5803_v34 = vpack.c.bf16 %v768_v36, %v761_v24  ;;  %v649_v61 = vand.u32 4294901760, %v648_v9  ;;  %v656_v1 = vand.u32 4294901760, %v655_v44  ;;  %v774_v55 = vsub.f32 %v6766_v35, %v7881_v29 }
  0x49   : > { %7940 = vst [vmem:[#allocation14_spill] sm:$0xff] %v6826_v23  ;;  %v547_v18 = vsub.f32 %v6813_v41, %v6826_v23  ;;  %v781_v19 = vsub.f32 %v6776_v10, %v7884_v59  ;;  %v6840_v47 = vand.u32 4294901760, %v553_v2  ;;  %v7882_v36 = vand.u32 4294901760, %v6810_v53 }
  0x4a   : > { %5804 = vmatprep.subr.bf16.mxu1 %v5803_v34  ;;  %v5805_v52 = vpack.c.bf16 %v656_v1, %v649_v61  ;;  %v5813_v9 = vpack.c.bf16 %v6512_v21, %v6502_v15  ;;  %v775_v44 = vand.u32 4294901760, %v774_v55  ;;  %v5815_v29 = vpack.c.bf16 %v6525_v26, %v6523_v25 }
  0x4b   : > { %v6844_v24 = vand.u32 4294901760, %v547_v18  ;;  %v782_v7 = vand.u32 4294901760, %v781_v19  ;;  %v662_v2 = vsub.f32 %v6782_v8, %v7883_v56  ;;  %v669_v1 = vsub.f32 %v6810_v53, %v7882_v36 }
  0x4c   : > { %5806 = vmatpush3.bf16.msra.mxu1 %v5805_v52  ;;  %v5817_v52 = vpack.c.bf16 %v6542_v38, %v6529_v28  ;;  %v5819_v19 = vpack.c.bf16 %v6552_v43, %v6546_v40  ;;  %v5821_v36 = vpack.c.bf16 %v6581_v58, %v6557_v46  ;;  %v7945_v56 = vand.u32 4294901760, %v6523_v25 }
  0x4d   : > { %549 = vmatprep.mubr.f32.mxu0 %v6844_v24  ;;  %v5807_v18 = vpack.c.bf16 %v782_v7, %v775_v44  ;;  %v663_v34 = vand.u32 4294901760, %v662_v2  ;;  %v670_v61 = vand.u32 4294901760, %v669_v1  ;;  %v7941_v7 = vand.u32 4294901760, %v6532_v31 }
  0x4e   : > { %555 = vmatmul.mubr.f32.vlgmr.msra.gmra.mrb[0].mxu0 %v6840_v47  ;;  %v7942_v44 = vand.u32 4294901760, %v6534_v32  ;;  %v7944_v1 = vand.u32 4294901760, %v6512_v21  ;;  %v7948_v59 = vand.u32 4294901760, %v6542_v38  ;;  %v7949_v31 = vand.u32 4294901760, %v6546_v40 }
  0x4f   : > { %5814 = vmatpush3.bf16.msra.mxu0 %v5813_v9  ;;  %5808 = vmatprep.subr.bf16.mxu1 %v5807_v18  ;;  %v5809_v55 = vpack.c.bf16 %v670_v61, %v663_v34  ;;  %v7943_v9 = vand.u32 4294901760, %v6502_v15  ;;  %v7947_v61 = vand.u32 4294901760, %v6529_v28  ;;  %v7950_v32 = vand.u32 4294901760, %v6552_v43 }
  0x50   : > { %5816 = vmatprep.subr.bf16.mxu0 %v5815_v29  ;;  %922 = vmatprep.mubr.f32.mxu0 %v6813_v41  ;;  %v5875_v2 = vpack.c.bf16 %v7942_v44, %v7941_v7  ;;  %v7946_v29 = vand.u32 4294901760, %v6525_v26  ;;  %v7951_v15 = vand.u32 4294901760, %v6557_v46  ;;  %v7952_v21 = vand.u32 4294901760, %v6581_v58 }
  0x51   : > { %v5877_v18 = vpack.c.bf16 %v7944_v1, %v7943_v9  ;;  %v6881_v41 = vpack.c.bf16 %v7948_v59, %v7947_v61  ;;  %v6887_v7 = vpack.c.bf16 %v7950_v32, %v7949_v31  ;;  %5810 = vmatpush3.bf16.msra.mxu1 %v5809_v55  ;;  %v7953_v26 = vand.u32 4294901760, %v6585_v63 }
  0x52   : > { %v5879_v34 = vpack.c.bf16 %v7946_v29, %v7945_v56  ;;  %v6893_v25 = vpack.c.bf16 %v7952_v21, %v7951_v15  ;;  %v7954_v28 = vand.u32 4294901760, %v6606_v12  ;;  %v7955_v56 = vand.u32 4294901760, %v6610_v17  ;;  %5844 = vmatprep.subr.bf16.mxu1 %v6500_v14 }
  0x53   : > { %v7956_v40 = vand.u32 4294901760, %v6624_v42  ;;  %v7957_v59 = vand.u32 4294901760, %v6628_v50  ;;  %v7958_v46 = vand.u32 4294901760, %v6643_v60  ;;  %5818 = vmatpush3.bf16.msra.mxu0 %v5817_v52  ;;  %v7959_v58 = vand.u32 4294901760, %v6652_v5 }
  0x54   : > { %v6899_v38 = vpack.c.bf16 %v7954_v28, %v7953_v26  ;;  %v7960_v44 = vand.u32 4294901760, %v6667_v30  ;;  %v7961_v1 = vand.u32 4294901760, %v6671_v51  ;;  %v7962_v29 = vand.u32 4294901760, %v6686_v3  ;;  %5820 = vmatprep.subr.bf16.mxu0 %v5819_v19  ;;  %787 = vmatmul.mubr.f32.vlgmr.msra.gmra.mrb[0].mxu1 %v6790_v13 }
  0x55   : > { %v6905_v43 = vpack.c.bf16 %v7956_v40, %v7955_v56  ;;  %v6911_v55 = vpack.c.bf16 %v7958_v46, %v7957_v59  ;;  %v7963_v31 = vand.u32 4294901760, %v6695_v0  ;;  %v7964_v32 = vand.u32 4294901760, %v6714_v6  ;;  %5846 = vmatpush3.bf16.msra.mxu1 %v6510_v20  ;;  %1029 = vmatprep.mubr.f32.mxu1 %v6826_v23  ;;  %v7971_v56 = vld [vmem:[#allocation10_spill] sm:$0xff]  ;;  %v7972_v46 = vld [vmem:[#allocation9_spill] sm:$0xff] }
  0x56   : > { %v6918_v9 = vpack.c.bf16 %v7960_v44, %v7959_v58  ;;  %v6924_v61 = vpack.c.bf16 %v7962_v29, %v7961_v1  ;;  %v5823_v52 = vpack.c.bf16 %v6606_v12, %v6585_v63  ;;  %v7965_v21 = vand.u32 4294901760, %v6743_v54  ;;  %5848 = vmatprep.subr.bf16.mxu1 %v6514_v22 }
  0x57   : > { %v6930_v15 = vpack.c.bf16 %v7964_v32, %v7963_v31  ;;  %v7966_v26 = vand.u32 4294901760, %v6762_v37  ;;  %5822 = vmatpush3.bf16.msra.mxu0 %v5821_v36  ;;  %v5825_v19 = vpack.c.bf16 %v6624_v42, %v6610_v17  ;;  %v5827_v63 = vpack.c.bf16 %v6643_v60, %v6628_v50  ;;  %v7973_v31 = vld [vmem:[#allocation13_spill] sm:$0xff] }
  0x58   : > { %5824 = vmatprep.subr.bf16.mxu0 %v5823_v52  ;;  %v5829_v12 = vpack.c.bf16 %v6667_v30, %v6652_v5  ;;  %v5831_v36 = vpack.c.bf16 %v6686_v3, %v6671_v51  ;;  %v5833_v17 = vpack.c.bf16 %v6714_v6, %v6695_v0  ;;  %v5835_v42 = vpack.c.bf16 %v6734_v57, %v6718_v33  ;;  %v7967_v5 = vld [vmem:[#allocation6_spill] sm:$0xff]  ;;  %v1328_v30 = vld [vmem:[%s7828_s2 + $0x88] sm:$0xff]  ;;  %v7968_v51 = vld [vmem:[#allocation11_spill] sm:$0xff] }
  0x59   : > { %v6938_v28 = vpack.c.bf16 %v7966_v26, %v7965_v21  ;;  %5850 = vmatpush3.bf16.msra.mxu1 %v6527_v27  ;;  %v5837_v50 = vpack.c.bf16 %v6762_v37, %v6743_v54  ;;  %v5839_v60 = vpack.c.bf16 %v6776_v10, %v6766_v35  ;;  %v5841_v0 = vpack.c.bf16 %v6810_v53, %v6782_v8  ;;  %v1327_v54 = vld [vmem:[%s7828_s2 + $0x80] sm:$0xff]  ;;  %v7969_v3 = vld [vmem:[#allocation7_spill] sm:$0xff] }
  0x5a   : > { %5852 = vmatprep.subr.bf16.mxu1 %v6544_v39  ;;  %v7970_v6 = vld [vmem:[#allocation8_spill] sm:$0xff]  ;;  %v1392_v40 = vand.u32 4294901760, %v1327_v54  ;;  %v1395_v59 = vand.u32 4294901760, %v1328_v30  ;;  %vm2209_vm1 = vcmask 31744   ;;  %vm2213_vm2 = vcmask 1043456  }
  0x5b   : > { %5826 = vmatpush3.bf16.msra.mxu0 %v5825_v19  ;;  %v1311_v37 = vld [vmem:[%s7828_s2] sm:$0xff]  ;;  %vm2687_vm3 = vcmask 64512   ;;  %vm4065_vm4 = vcmask 130048  }
  0x5c   : > { %5828 = vmatprep.subr.bf16.mxu0 %v5827_v63  ;;  %v1344_v58 = vand.u32 4294901760, %v1311_v37  ;;  %v6998_v1 = vsub.f32 %v1327_v54, %v1392_v40  ;;  %v7000_v29 = vsub.f32 %v1328_v30, %v1395_v59  ;;  %v7978_v30 = vand.u32 4294901760, %v6782_v8  ;;  %v1333_v8 = vld [vmem:[%s7828_s2 + $0xb0] sm:$0xff] }
  0x5d   : > { %5854 = vmatpush3.bf16.msra.mxu1 %v6555_v45 }
  0x5e   : > { %5856 = vmatprep.subr.bf16.mxu1 %v6583_v62  ;;  %v7010_v32 = vsub.f32 %v1311_v37, %v1344_v58  ;;  %v7893_v63 = vand.u32 4294901760, %v6998_v1  ;;  %v7979_v37 = vand.u32 4294901760, %v6810_v53 }
  0x5f   : > { %5830 = vmatpush3.bf16.msra.mxu0 %v5829_v12  ;;  %v7892_v12 = vand.u32 4294901760, %v7000_v29 }
  0x60   : > { %5832 = vmatprep.subr.bf16.mxu0 %v5831_v36  ;;  %v7974_v36 = vand.u32 4294901760, %v6718_v33  ;;  %v1316_v33 = vld [vmem:[%s7828_s2 + $0x28] sm:$0xff] }
  0x61   : > { %5858 = vmatpush3.bf16.msra.mxu1 %v6608_v16 }
  0x62   : > { %5860 = vmatprep.subr.bf16.mxu1 %v6626_v49 }
  0x63   : > { %5834 = vmatpush3.bf16.msra.mxu0 %v5833_v17  ;;  %v7975_v17 = vand.u32 4294901760, %v6734_v57  ;;  %v7887_v57 = vand.u32 4294901760, %v7010_v32 }
  0x64   : > { %5836 = vmatprep.subr.bf16.mxu0 %v5835_v42 }
  0x65   : > { %5862 = vmatpush3.bf16.msra.mxu1 %v6650_v4  ;;  %v5899_v42 = vpack.c.bf16 %v7975_v17, %v7974_v36  ;;  %v1334_v36 = vld [vmem:[%s7828_s2 + $0xb8] sm:$0xff] }
  0x66   : > { %5864 = vmatprep.subr.bf16.mxu1 %v6669_v48 }
  0x67   : > { %5838 = vmatpush3.bf16.msra.mxu0 %v5837_v50  ;;  %v1315_v50 = vld [vmem:[%s7828_s2 + $0x20] sm:$0xff] }
  0x68   : > { %5840 = vmatprep.subr.bf16.mxu0 %v5839_v60  ;;  %v7976_v60 = vand.u32 4294901760, %v6766_v35  ;;  %v1571_v35 = vsub.f32 %v6998_v1, %v7893_v63 }
  0x69   : > { %5866 = vmatpush3.bf16.msra.mxu1 %v6693_v11 }
  0x6a   : > { %5868 = vmatprep.subr.bf16.mxu1 %v7967_v5 }
  0x6b   : > { %5842 = vmatpush3.bf16.msra.mxu0 %v5841_v0  ;;  %v7977_v0 = vand.u32 4294901760, %v6776_v10  ;;  %v1578_v10 = vsub.f32 %v7000_v29, %v7892_v12 }
  0x6c   : > { %5876 = vmatprep.subr.bf16.mxu0 %v5875_v2  ;;  %v1312_v2 = vld [vmem:[%s7828_s2 + $0x8] sm:$0xff] }
  0x6d   : > { %5870 = vmatpush3.bf16.msra.mxu1 %v7969_v3  ;;  %v1347_v44 = vand.u32 4294901760, %v1312_v2  ;;  %v7049_v54 = vpack.c.bf16 %v7977_v0, %v7976_v60  ;;  %v1410_v0 = vand.u32 4294901760, %v1333_v8 }
  0x6e   : > { %925 = vmatmul.mubr.f32.vlgmr.msra.gmra.mrb[2].mxu0 %v7968_v51  ;;  %5872 = vmatprep.subr.bf16.mxu1 %v7970_v6 }
  0x6f   : > { %5878 = vmatpush3.bf16.msra.mxu0 %v5877_v18  ;;  %1199 = vmatprep.mubr.f32.mxu0 %v7971_v56  ;;  %v1329_v18 = vld [vmem:[%s7828_s2 + $0x90] sm:$0xff]  ;;  %v7012_v52 = vsub.f32 %v1312_v2, %v1347_v44  ;;  %v7055_v2 = vpack.c.bf16 %v7979_v37, %v7978_v30  ;;  %v7073_v53 = vpack.c.bf16 %v1347_v44, %v1344_v58  ;;  %v1572_v30 = vand.u32 4294901760, %v1571_v35 }
  0x70   : > { %5880 = vmatprep.subr.bf16.mxu0 %v5879_v34  ;;  %v1330_v34 = vld [vmem:[%s7828_s2 + $0x98] sm:$0xff]  ;;  %v1579_v37 = vand.u32 4294901760, %v1578_v10 }
  0x71   : > { %5874 = vmatpush3.bf16.msra.mxu1 %v7972_v46  ;;  %v1401_v21 = vand.u32 4294901760, %v1330_v34 }
  0x72   : > { %5908 = vmatprep.subr.bf16.mxu1 %v6500_v14  ;;  %v1313_v14 = vld [vmem:[%s7828_s2 + $0x10] sm:$0xff] }
  0x73   : > { %5882 = vmatpush3.bf16.msra.mxu0 %v6881_v41  ;;  %v1314_v41 = vld [vmem:[%s7828_s2 + $0x18] sm:$0xff]  ;;  %v1350_v26 = vand.u32 4294901760, %v1313_v14 }
  0x74   : > { %5884 = vmatprep.subr.bf16.mxu0 %v6887_v7  ;;  %1033 = vmatmul.mubr.f32.vlgmr.msra.gmra.mrb[2].mxu1 %v7973_v31  ;;  %v1398_v7 = vand.u32 4294901760, %v1329_v18  ;;  %v1353_v19 = vand.u32 4294901760, %v1314_v41 }
  0x75   : > { %5910 = vmatpush3.bf16.msra.mxu1 %v6510_v20  ;;  %1303 = vmatprep.mubr.f32.mxu1 %v7971_v56  ;;  %v1331_v20 = vld [vmem:[%s7828_s2 + $0xa0] sm:$0xff] }
  0x76   : > { %5912 = vmatprep.subr.bf16.mxu1 %v6514_v22  ;;  %v7028_v22 = vsub.f32 %v1329_v18, %v1398_v7  ;;  %v7057_v18 = vpack.c.bf16 %v1395_v59, %v1392_v40  ;;  %v1359_v59 = vand.u32 4294901760, %v1316_v33  ;;  %v7091_v17 = vpack.c.bf16 %v1353_v19, %v1350_v26 }
  0x77   : > { %5886 = vmatpush3.bf16.msra.mxu0 %v6893_v25  ;;  %v7030_v25 = vsub.f32 %v1330_v34, %v1401_v21  ;;  %v1404_v34 = vand.u32 4294901760, %v1331_v20 }
  0x78   : > { %5888 = vmatprep.subr.bf16.mxu0 %v6899_v38  ;;  %v1332_v38 = vld [vmem:[%s7828_s2 + $0xa8] sm:$0xff]  ;;  %v7888_v58 = vand.u32 4294901760, %v7028_v22  ;;  %7981 = vst [vmem:[#allocation7_spill] sm:$0xff] %v7091_v17 }
  0x79   : > { %5914 = vmatpush3.bf16.msra.mxu1 %v6527_v27  ;;  %v7886_v27 = vand.u32 4294901760, %v7012_v52  ;;  %v1407_v40 = vand.u32 4294901760, %v1332_v38  ;;  %v7891_v44 = vand.u32 4294901760, %v7030_v25  ;;  %v7093_v60 = vsub.f32 %v1331_v20, %v1404_v34 }
  0x7a   : > { %5916 = vmatprep.subr.bf16.mxu1 %v6544_v39  ;;  %v7062_v39 = vsub.f32 %v1314_v41, %v1353_v19  ;;  %v1585_v10 = vsub.f32 %v7028_v22, %v7888_v58  ;;  %v7128_v58 = vsub.f32 %v1333_v8, %v1410_v0 }
  0x7b   : > { %5890 = vmatpush3.bf16.msra.mxu0 %v6905_v43  ;;  %v7060_v43 = vsub.f32 %v1313_v14, %v1350_v26  ;;  %v1459_v14 = vsub.f32 %v7010_v32, %v7887_v57  ;;  %v1466_v41 = vsub.f32 %v7012_v52, %v7886_v27  ;;  %v1317_v27 = vld [vmem:[%s7828_s2 + $0x30] sm:$0xff]  ;;  %v7106_v26 = vsub.f32 %v1332_v38, %v1407_v40 }
  0x7c   : > { %5892 = vmatprep.subr.bf16.mxu0 %v6911_v55  ;;  %v1356_v55 = vand.u32 4294901760, %v1315_v50  ;;  %v1592_v57 = vsub.f32 %v7030_v25, %v7891_v44 }
  0x7d   : > { %5918 = vmatpush3.bf16.msra.mxu1 %v6555_v45  ;;  %v7089_v45 = vpack.c.bf16 %v1401_v21, %v1398_v7  ;;  %v7889_v7 = vand.u32 4294901760, %v7062_v39  ;;  %v7104_v21 = vpack.c.bf16 %v1407_v40, %v1404_v34  ;;  %v1460_v20 = vand.u32 4294901760, %v1459_v14  ;;  %v1335_v14 = vld [vmem:[%s7828_s2 + $0xc0] sm:$0xff] }
  0x7e   : > { %5920 = vmatprep.subr.bf16.mxu1 %v6583_v62  ;;  %v7890_v62 = vand.u32 4294901760, %v7060_v43  ;;  %v7108_v19 = vpack.c.bf16 %v1359_v59, %v1356_v55  ;;  %v1467_v35 = vand.u32 4294901760, %v1466_v41  ;;  %v7119_v38 = vsub.f32 %v1315_v50, %v1356_v55  ;;  %v1336_v50 = vld [vmem:[%s7828_s2 + $0xc8] sm:$0xff] }
  0x7f   : > { %5894 = vmatpush3.bf16.msra.mxu0 %v6918_v9  ;;  %7980 = vst [vmem:[#allocation6_spill] sm:$0xff] %v7089_v45  ;;  %v1318_v9 = vld [vmem:[%s7828_s2 + $0x38] sm:$0xff]  ;;  %7982 = vst [vmem:[#allocation8_spill] sm:$0xff] %v7104_v21  ;;  %v7121_v34 = vsub.f32 %v1316_v33, %v1359_v59  ;;  %v1362_v40 = vand.u32 4294901760, %v1317_v27  ;;  %v7126_v41 = vpack.c.bf16 %v1579_v37, %v1572_v30  ;;  %v7895_v8 = vand.u32 4294901760, %v7106_v26  ;;  %v1319_v59 = vld [vmem:[%s7828_s2 + $0x40] sm:$0xff] }
  0x80   : > { %5896 = vmatprep.subr.bf16.mxu0 %v6924_v61  ;;  %7983 = vst [vmem:[#allocation9_spill] sm:$0xff] %v7108_v19  ;;  %v1413_v61 = vand.u32 4294901760, %v1334_v36  ;;  %v7149_v30 = vpack.c.bf16 %v1467_v35, %v1460_v20  ;;  %v1586_v37 = vand.u32 4294901760, %v1585_v10  ;;  %v7894_v44 = vand.u32 4294901760, %v7119_v38 }
  0x81   : > { %5922 = vmatpush3.bf16.msra.mxu1 %v6608_v16  ;;  %v1365_v16 = vand.u32 4294901760, %v1318_v9  ;;  %v7161_v20 = vsub.f32 %v1317_v27, %v1362_v40  ;;  %v1368_v10 = vand.u32 4294901760, %v1319_v59 }
  0x82   : > { %5924 = vmatprep.subr.bf16.mxu1 %v6626_v49  ;;  %v1480_v49 = vsub.f32 %v7062_v39, %v7889_v7  ;;  %v7139_v33 = vpack.c.bf16 %v1413_v61, %v1410_v0  ;;  %v7141_v55 = vsub.f32 %v1334_v36, %v1413_v61  ;;  %v1593_v7 = vand.u32 4294901760, %v1592_v57  ;;  %v1320_v36 = vld [vmem:[%s7828_s2 + $0x48] sm:$0xff] }
  0x83   : > { %5898 = vmatpush3.bf16.msra.mxu0 %v6930_v15  ;;  %v1473_v15 = vsub.f32 %v7060_v43, %v7890_v62  ;;  %v1416_v62 = vand.u32 4294901760, %v1335_v14  ;;  %v7156_v0 = vpack.c.bf16 %v1365_v16, %v1362_v40  ;;  %v1419_v61 = vand.u32 4294901760, %v1336_v50 }
  0x84   : > { %5900 = vmatprep.subr.bf16.mxu0 %v5899_v42  ;;  %7984 = vst [vmem:[#allocation15_spill] sm:$0xff] %v7139_v33  ;;  %v7896_v42 = vand.u32 4294901760, %v7093_v60  ;;  %v1481_v35 = vand.u32 4294901760, %v1480_v49  ;;  %v7163_v12 = vsub.f32 %v1318_v9, %v1365_v16  ;;  %v1371_v63 = vand.u32 4294901760, %v1320_v36  ;;  %v1338_v9 = vld [vmem:[%s7828_s2 + $0xd8] sm:$0xff] }
  0x85   : > { %5926 = vmatpush3.bf16.msra.mxu1 %v6650_v4  ;;  %7985 = vst [vmem:[#allocation16_spill] sm:$0xff] %v7156_v0  ;;  %v7897_v4 = vand.u32 4294901760, %v7121_v34  ;;  %v1474_v57 = vand.u32 4294901760, %v1473_v15  ;;  %v7175_v27 = vpack.c.bf16 %v1593_v7, %v1586_v37  ;;  %v7177_v40 = vsub.f32 %v1335_v14, %v1416_v62  ;;  %v1321_v14 = vld [vmem:[%s7828_s2 + $0x50] sm:$0xff] }
  0x86   : > { %5928 = vmatprep.subr.bf16.mxu1 %v6669_v48  ;;  %v1599_v48 = vsub.f32 %v7093_v60, %v7896_v42  ;;  %v7898_v16 = vand.u32 4294901760, %v7128_v58  ;;  %v7186_v49 = vpack.c.bf16 %v1419_v61, %v1416_v62  ;;  %v1425_v15 = vand.u32 4294901760, %v1338_v9 }
  0x87   : > { %5902 = vmatpush3.bf16.msra.mxu0 %v6938_v28  ;;  %v1606_v28 = vsub.f32 %v7106_v26, %v7895_v8  ;;  %7986 = vst [vmem:[#allocation17_spill] sm:$0xff] %v7177_v40  ;;  %v1494_v7 = vsub.f32 %v7121_v34, %v7897_v4  ;;  %v7198_v37 = vpack.c.bf16 %v1481_v35, %v1474_v57  ;;  %v1374_v57 = vand.u32 4294901760, %v1321_v14  ;;  %v7234_v35 = vld [vmem:[%s7828_s2 + $0xe8] sm:$0xff] }
  0x88   : > { %5904 = vmatprep.subr.bf16.mxu0 %v7049_v54  ;;  %v1337_v54 = vld [vmem:[%s7828_s2 + $0xd0] sm:$0xff]  ;;  %v1600_v8 = vand.u32 4294901760, %v1599_v48  ;;  %v7207_v4 = vpack.c.bf16 %v1371_v63, %v1368_v10  ;;  %v7993_v23 = vand.u32 4294901760, %v7161_v20 }
  0x89   : > { %5930 = vmatpush3.bf16.msra.mxu1 %v6693_v11  ;;  %v1487_v11 = vsub.f32 %v7119_v38, %v7894_v44  ;;  %v1422_v62 = vand.u32 4294901760, %v1337_v54  ;;  %v1322_v44 = vld [vmem:[%s7828_s2 + $0x58] sm:$0xff]  ;;  %v1607_v42 = vand.u32 4294901760, %v1606_v28  ;;  %v1495_v48 = vand.u32 4294901760, %v1494_v7 }
  0x8a   : > { %5932 = vmatprep.subr.bf16.mxu1 %v7967_v5  ;;  %v7202_v5 = vsub.f32 %v1319_v59, %v1368_v10  ;;  %v7989_v59 = vand.u32 4294901760, %v7141_v55  ;;  %v7221_v10 = vld [vmem:[%s7828_s2 + $0xe0] sm:$0xff]  ;;  %v1377_v28 = vand.u32 4294901760, %v1322_v44  ;;  %v1501_v51 = vsub.f32 %v7161_v20, %v7993_v23  ;;  %v7266_v23 = vld [vmem:[%s7828_s2 + $0x68] sm:$0xff] }
  0x8b   : > { %5906 = vmatpush3.bf16.msra.mxu0 %v7055_v2  ;;  %v7200_v2 = vsub.f32 %v1336_v50, %v1419_v61  ;;  %v1613_v50 = vsub.f32 %v7128_v58, %v7898_v16  ;;  %v7229_v31 = vsub.f32 %v1337_v54, %v1422_v62  ;;  %v7239_v7 = vpack.c.bf16 %v1425_v15, %v1422_v62 }
  0x8c   : > { %5940 = vmatprep.subr.bf16.mxu0 %v7057_v18  ;;  %7988 = vst [vmem:[#allocation19_spill] sm:$0xff] %v7202_v5  ;;  %v1620_v61 = vsub.f32 %v7141_v55, %v7989_v59  ;;  %v7227_v59 = vsub.f32 %v1320_v36, %v1371_v63  ;;  %v7241_v16 = vsub.f32 %v1338_v9, %v1425_v15  ;;  %v7905_v63 = vand.u32 4294901760, %v7221_v10  ;;  %v7261_v15 = vld [vmem:[%s7828_s2 + $0x60] sm:$0xff] }
  0x8d   : > { %7987 = vst [vmem:[#allocation18_spill] sm:$0xff] %v7200_v2  ;;  %5934 = vmatpush3.bf16.msra.mxu1 %v7969_v3  ;;  %v1488_v3 = vand.u32 4294901760, %v1487_v11  ;;  %7991 = vst [vmem:[#allocation21_spill] sm:$0xff] %v7229_v31  ;;  %v5979_v11 = vpack.c.bf16 %v1607_v42, %v1600_v8  ;;  %v1614_v36 = vand.u32 4294901760, %v1613_v50  ;;  %v7252_v42 = vpack.c.bf16 %v1377_v28, %v1374_v57 }
  0x8e   : > { %1201 = vmatmul.mubr.f32.vlgmr.msra.gmra.mrb[4].mxu0 %v6790_v13  ;;  %5936 = vmatprep.subr.bf16.mxu1 %v7970_v6  ;;  %7990 = vst [vmem:[#allocation20_spill] sm:$0xff] %v7227_v59  ;;  %v7902_v6 = vand.u32 4294901760, %v7200_v2  ;;  %7992 = vst [vmem:[#allocation22_spill] sm:$0xff] %v7241_v16  ;;  %v1621_v54 = vand.u32 4294901760, %v1620_v61  ;;  %v7994_v8 = vand.u32 4294901760, %v7163_v12  ;;  %v1502_v50 = vand.u32 4294901760, %v1501_v51 }
  0x8f   : > { %5942 = vmatpush3.bf16.msra.mxu0 %v7073_v53  ;;  %1444 = vmatprep.mubr.f32.mxu0 %v6844_v24  ;;  %v5981_v24 = vpack.c.bf16 %v1495_v48, %v1488_v3  ;;  %v7285_v3 = vld [vmem:[%s7828_s2 + $0xf8] sm:$0xff]  ;;  %v7288_v48 = vsub.f32 %v1322_v44, %v1377_v28  ;;  %v7996_v28 = vand.u32 4294901760, %v7234_v35 }
  0x90   : > { %5944 = vmatprep.subr.bf16.mxu0 %v7089_v45  ;;  %v7245_v45 = vsub.f32 %v1321_v14, %v1374_v57  ;;  %v1508_v9 = vsub.f32 %v7163_v12, %v7994_v8  ;;  %v1634_v62 = vsub.f32 %v7200_v2, %v7902_v6  ;;  %v7280_v57 = vld [vmem:[%s7828_s2 + $0xf0] sm:$0xff]  ;;  %v7293_v8 = vsub.f32 %v7221_v10, %v7905_v63 }
  0x91   : > { %5938 = vmatpush3.bf16.msra.mxu1 %v7972_v46  ;;  %v5983_v61 = vpack.c.bf16 %v1621_v54, %v1614_v36  ;;  %v1380_v46 = vand.u32 4294901760, %v7261_v15  ;;  %v7306_v63 = vsub.f32 %v7234_v35, %v7996_v28  ;;  %v1437_v51 = vand.u32 4294901760, %v7285_v3  ;;  %v7313_v36 = vld [vmem:[%s7828_s2 + $0x70] sm:$0xff]  ;;  %v7318_v54 = vld [vmem:[%s7828_s2 + $0x78] sm:$0xff] }
  0x92   : > { %5972 = vmatprep.subr.bf16.mxu1 %v7126_v41  ;;  %v7995_v41 = vand.u32 4294901760, %v7177_v40  ;;  %v1509_v44 = vand.u32 4294901760, %v1508_v9  ;;  %v1635_v9 = vand.u32 4294901760, %v1634_v62  ;;  %v7997_v28 = vand.u32 4294901760, %v7202_v5 }
  0x93   : > { %5946 = vmatpush3.bf16.msra.mxu0 %v7091_v17  ;;  %v7998_v6 = vand.u32 4294901760, %v7227_v59  ;;  %v8000_v17 = vand.u32 4294901760, %v7241_v16  ;;  %v7337_v62 = vsub.f32 %v7261_v15, %v1380_v46 }
  0x94   : > { %5948 = vmatprep.subr.bf16.mxu0 %v7104_v21  ;;  %v1627_v14 = vsub.f32 %v7177_v40, %v7995_v41  ;;  %1305 = vmatmul.mubr.f32.vlgmr.msra.gmra.mrb[4].mxu1 %v6790_v13  ;;  %v1383_v21 = vand.u32 4294901760, %v7266_v23  ;;  %v8003_v40 = vand.u32 4294901760, %v7288_v48 }
  0x95   : > { %5974 = vmatpush3.bf16.msra.mxu1 %v7149_v30  ;;  %1680 = vmatprep.mubr.f32.mxu1 %v7971_v56  ;;  %v1515_v30 = vsub.f32 %v7202_v5, %v7997_v28  ;;  %v1522_v41 = vsub.f32 %v7227_v59, %v7998_v6  ;;  %v7999_v56 = vand.u32 4294901760, %v7229_v31  ;;  %v1648_v2 = vsub.f32 %v7241_v16, %v8000_v17 }
  0x96   : > { %5976 = vmatprep.subr.bf16.mxu1 %v7175_v27  ;;  %v1628_v27 = vand.u32 4294901760, %v1627_v14  ;;  %v7340_v28 = vsub.f32 %v7266_v23, %v1383_v21  ;;  %v1386_v6 = vand.u32 4294901760, %v7313_v36  ;;  %v8001_v17 = vand.u32 4294901760, %v7280_v57 }
  0x97   : > { %5950 = vmatpush3.bf16.msra.mxu0 %v7108_v19  ;;  %v1641_v19 = vsub.f32 %v7229_v31, %v7999_v56  ;;  %v1389_v56 = vand.u32 4294901760, %v7318_v54  ;;  %v5985_v14 = vpack.c.bf16 %v1509_v44, %v1502_v50  ;;  %v1516_v31 = vand.u32 4294901760, %v1515_v30 }
  0x98   : > { %5952 = vmatprep.subr.bf16.mxu0 %v7139_v33  ;;  %v7348_v33 = vsub.f32 %v7280_v57, %v8001_v17  ;;  %v5987_v16 = vpack.c.bf16 %v1635_v9, %v1628_v27  ;;  %v1523_v59 = vand.u32 4294901760, %v1522_v41  ;;  %v8002_v5 = vand.u32 4294901760, %v7245_v45 }
  0x99   : > { %5978 = vmatpush3.bf16.msra.mxu1 %v7198_v37  ;;  %v7351_v37 = vsub.f32 %v7285_v3, %v1437_v51  ;;  %v1536_v3 = vsub.f32 %v7288_v48, %v8003_v40  ;;  %v7363_v15 = vsub.f32 %v7313_v36, %v1386_v6  ;;  %v7366_v23 = vsub.f32 %v7318_v54, %v1389_v56 }
  0x9a   : > { %5980 = vmatprep.subr.bf16.mxu1 %v5979_v11  ;;  %v1649_v11 = vand.u32 4294901760, %v1648_v2  ;;  %v1529_v17 = vsub.f32 %v7245_v45, %v8002_v5  ;;  %v1542_v50 = vand.u32 4294901760, %v7337_v62  ;;  %v8004_v2 = vand.u32 4294901760, %v7293_v8 }
  0x9b   : > { %5954 = vmatpush3.bf16.msra.mxu0 %v7156_v0  ;;  %v1642_v0 = vand.u32 4294901760, %v1641_v19  ;;  %v8005_v40 = vand.u32 4294901760, %v7306_v63  ;;  %v8006_v30 = vand.u32 4294901760, %v7221_v10  ;;  %v8007_v36 = vand.u32 4294901760, %v7234_v35 }
  0x9c   : > { %5956 = vmatprep.subr.bf16.mxu0 %v7186_v49  ;;  %v1655_v5 = vsub.f32 %v7293_v8, %v8004_v2  ;;  %v5989_v27 = vpack.c.bf16 %v1523_v59, %v1516_v31  ;;  %v1530_v2 = vand.u32 4294901760, %v1529_v17  ;;  %v1537_v19 = vand.u32 4294901760, %v1536_v3 }
  0x9d   : > { %5982 = vmatpush3.bf16.msra.mxu1 %v5981_v24  ;;  %v1662_v24 = vsub.f32 %v7306_v63, %v8005_v40  ;;  %v7384_v54 = vpack.c.bf16 %v8007_v36, %v8006_v30  ;;  %v5991_v9 = vpack.c.bf16 %v1649_v11, %v1642_v0  ;;  %v1543_v40 = vsub.f32 %v7337_v62, %v1542_v50 }
  0x9e   : > { %5984 = vmatprep.subr.bf16.mxu1 %v5983_v61  ;;  %v7386_v61 = vpack.c.bf16 %v1383_v21, %v1380_v46  ;;  %v8008_v44 = vand.u32 4294901760, %v7340_v28  ;;  %v1556_v10 = vand.u32 4294901760, %v7363_v15  ;;  %v1563_v35 = vand.u32 4294901760, %v7366_v23 }
  0x9f   : > { %5958 = vmatpush3.bf16.msra.mxu0 %v7207_v4  ;;  %v1656_v31 = vand.u32 4294901760, %v1655_v5  ;;  %v1663_v21 = vand.u32 4294901760, %v1662_v24  ;;  %v8009_v0 = vand.u32 4294901760, %v7348_v33  ;;  %v8010_v46 = vand.u32 4294901760, %v7351_v37 }
  0xa0   : > { %5960 = vmatprep.subr.bf16.mxu0 %v7239_v7  ;;  %v1550_v41 = vsub.f32 %v7340_v28, %v8008_v44  ;;  %v8011_v11 = vand.u32 4294901760, %v7280_v57  ;;  %v5993_v3 = vpack.c.bf16 %v1537_v19, %v1530_v2  ;;  %v1544_v44 = vand.u32 4294901760, %v1543_v40 }
  0xa1   : > { %5986 = vmatpush3.bf16.msra.mxu1 %v5985_v14  ;;  %v1669_v59 = vsub.f32 %v7348_v33, %v8009_v0  ;;  %v1676_v14 = vsub.f32 %v7351_v37, %v8010_v46  ;;  %v1557_v5 = vsub.f32 %v7363_v15, %v1556_v10  ;;  %v1564_v24 = vsub.f32 %v7366_v23, %v1563_v35  ;;  %v8012_v0 = vld [vmem:[#allocation12_spill] sm:$0xff]  ;;  %v8013_v46 = vld [vmem:[#allocation14_spill] sm:$0xff] }
  0xa2   : > { %5988 = vmatprep.subr.bf16.mxu1 %v5987_v16  ;;  %v7406_v17 = vpack.c.bf16 %v1437_v51, %v8011_v11  ;;  %v1551_v16 = vand.u32 4294901760, %v1550_v41  ;;  %v7415_v30 = vpack.c.bf16 %v1389_v56, %v1386_v6  ;;  %v5995_v57 = vpack.c.bf16 %v1663_v21, %v1656_v31 }
  0xa3   : > { %5962 = vmatpush3.bf16.msra.mxu0 %v7252_v42  ;;  %v1670_v51 = vand.u32 4294901760, %v1669_v59  ;;  %v1677_v36 = vand.u32 4294901760, %v1676_v14  ;;  %v6003_v19 = vpack.c.bf16 %v7000_v29, %v6998_v1  ;;  %v1565_v2 = vand.u32 4294901760, %v1564_v24  ;;  %v8014_v14 = vld [vmem:[#allocation6_spill] sm:$0xff]  ;;  %v8018_v24 = vld [vmem:[#allocation8_spill] sm:$0xff] }
  0xa4   : > { %5964 = vmatprep.subr.bf16.mxu0 %v7384_v54  ;;  %v5997_v41 = vpack.c.bf16 %v1551_v16, %v1544_v44  ;;  %v6007_v56 = vpack.c.bf16 %v7030_v25, %v7028_v22  ;;  %v6009_v31 = vpack.c.bf16 %v7062_v39, %v7060_v43  ;;  %v6011_v21 = vpack.c.bf16 %v7106_v26, %v7093_v60  ;;  %v8016_v44 = vld [vmem:[#allocation18_spill] sm:$0xff] }
  0xa5   : > { %5990 = vmatpush3.bf16.msra.mxu1 %v5989_v27  ;;  %v1558_v27 = vand.u32 4294901760, %v1557_v5  ;;  %v5999_v6 = vpack.c.bf16 %v1677_v36, %v1670_v51  ;;  %v6015_v59 = vpack.c.bf16 %v7141_v55, %v7128_v58  ;;  %v6017_v11 = vpack.c.bf16 %v7163_v12, %v7161_v20  ;;  %v8017_v5 = vld [vmem:[#allocation7_spill] sm:$0xff]  ;;  %v8020_v51 = vld [vmem:[#allocation20_spill] sm:$0xff] }
  0xa6   : > { %5992 = vmatprep.subr.bf16.mxu1 %v5991_v9  ;;  %v6005_v9 = vpack.c.bf16 %v7012_v52, %v7010_v32 }
  0xa7   : > { %5966 = vmatpush3.bf16.msra.mxu0 %v7386_v61  ;;  %v6001_v40 = vpack.c.bf16 %v1565_v2, %v1558_v27  ;;  %v8023_v2 = vld [vmem:[#allocation9_spill] sm:$0xff] }
  0xa8   : > { %5968 = vmatprep.subr.bf16.mxu0 %v7406_v17 }
  0xa9   : > { %5994 = vmatpush3.bf16.msra.mxu1 %v5993_v3  ;;  %v8015_v3 = vld [vmem:[#allocation17_spill] sm:$0xff] }
  0xaa   : > { %5996 = vmatprep.subr.bf16.mxu1 %v5995_v57  ;;  %v6019_v16 = vpack.c.bf16 %v8016_v44, %v8015_v3  ;;  %v8019_v57 = vld [vmem:[#allocation19_spill] sm:$0xff] }
  0xab   : > { %5970 = vmatpush3.bf16.msra.mxu0 %v7415_v30  ;;  %v6021_v36 = vpack.c.bf16 %v8020_v51, %v8019_v57 }
  0xac   : > { %6004 = vmatprep.subr.bf16.mxu0 %v6003_v19  ;;  %v8021_v19 = vld [vmem:[#allocation21_spill] sm:$0xff] }
  0xad   : > { %5998 = vmatpush3.bf16.msra.mxu1 %v5997_v41  ;;  %v8022_v41 = vld [vmem:[#allocation22_spill] sm:$0xff] }
  0xae   : > { %1450 = vmatmul.mubr.f32.vlgmr.msra.gmra.mrb[6].mxu0 %v6840_v47  ;;  %6000 = vmatprep.subr.bf16.mxu1 %v5999_v6  ;;  %v6013_v47 = vpack.c.bf16 %v7121_v34, %v7119_v38  ;;  %v6023_v27 = vpack.c.bf16 %v8022_v41, %v8021_v19  ;;  %v6025_v6 = vpack.c.bf16 %v7288_v48, %v7245_v45 }
  0xaf   : > { %6006 = vmatpush3.bf16.msra.mxu0 %v6005_v9  ;;  %1817 = vmatprep.mubr.f32.mxu0 %v8012_v0  ;;  %v8024_v9 = vld [vmem:[#allocation15_spill] sm:$0xff]  ;;  %v6033_v0 = vpack.c.bf16 %v7366_v23, %v7363_v15 }
  0xb0   : > { %6008 = vmatprep.subr.bf16.mxu0 %v6007_v56  ;;  %v6027_v56 = vpack.c.bf16 %v7306_v63, %v7293_v8 }
  0xb1   : > { %6002 = vmatpush3.bf16.msra.mxu1 %v6001_v40  ;;  %v8025_v40 = vld [vmem:[#allocation16_spill] sm:$0xff] }
  0xb2   : > { %6036 = vmatprep.subr.bf16.mxu1 %v7057_v18 }
  0xb3   : > { %6010 = vmatpush3.bf16.msra.mxu0 %v6009_v31  ;;  %v6029_v31 = vpack.c.bf16 %v7340_v28, %v7337_v62 }
  0xb4   : > { %6012 = vmatprep.subr.bf16.mxu0 %v6011_v21  ;;  %1682 = vmatmul.mubr.f32.vlgmr.msra.gmra.mrb[6].mxu1 %v6790_v13  ;;  %v6031_v21 = vpack.c.bf16 %v7351_v37, %v7348_v33 }
  0xb5   : > { %6038 = vmatpush3.bf16.msra.mxu1 %v7073_v53  ;;  %1924 = vmatprep.mubr.f32.mxu1 %v8013_v46 }
  0xb6   : > { %6040 = vmatprep.subr.bf16.mxu1 %v8014_v14 }
  0xb7   : > { %6014 = vmatpush3.bf16.msra.mxu0 %v6013_v47  ;;  %v8026_v47 = vand.u32 4294901760, %v6998_v1  ;;  %v8032_v1 = vld [vmem:[#allocation11_spill] sm:$0xff] }
  0xb8   : > { %6016 = vmatprep.subr.bf16.mxu0 %v6015_v59  ;;  %v8027_v59 = vand.u32 4294901760, %v7000_v29  ;;  %v8033_v29 = vand.u32 4294901760, %v7060_v43  ;;  %v8039_v43 = vand.u32 4294901760, %v7121_v34 }
  0xb9   : > { %6042 = vmatpush3.bf16.msra.mxu1 %v8017_v5 }
  0xba   : > { %6044 = vmatprep.subr.bf16.mxu1 %v8018_v24  ;;  %v6067_v46 = vpack.c.bf16 %v8027_v59, %v8026_v47 }
  0xbb   : > { %6018 = vmatpush3.bf16.msra.mxu0 %v6017_v11  ;;  %v8028_v11 = vand.u32 4294901760, %v7010_v32  ;;  %v8034_v32 = vand.u32 4294901760, %v7062_v39  ;;  %v8040_v39 = vand.u32 4294901760, %v7128_v58  ;;  %v8045_v58 = vand.u32 4294901760, %v8015_v3 }
  0xbc   : > { %6020 = vmatprep.subr.bf16.mxu0 %v6019_v16  ;;  %v8029_v16 = vand.u32 4294901760, %v7012_v52  ;;  %v8035_v52 = vand.u32 4294901760, %v7093_v60  ;;  %v8041_v60 = vand.u32 4294901760, %v7141_v55  ;;  %v8046_v55 = vand.u32 4294901760, %v8016_v44 }
  0xbd   : > { %6046 = vmatpush3.bf16.msra.mxu1 %v8023_v2  ;;  %v8051_v3 = vand.u32 4294901760, %v7245_v45  ;;  %v8052_v44 = vand.u32 4294901760, %v7288_v48  ;;  %v8056_v45 = vand.u32 4294901760, %v7348_v33  ;;  %v8057_v48 = vand.u32 4294901760, %v7351_v37 }
  0xbe   : > { %6048 = vmatprep.subr.bf16.mxu1 %v8024_v9  ;;  %v6079_v59 = vpack.c.bf16 %v8041_v60, %v8040_v39  ;;  %v6359_v33 = vmov 0.0  }
  0xbf   : > { %6022 = vmatpush3.bf16.msra.mxu0 %v6021_v36  ;;  %v6069_v36 = vpack.c.bf16 %v8029_v16, %v8028_v11 }
  0xc0   : > { %6024 = vmatprep.subr.bf16.mxu0 %v6023_v27  ;;  %v8030_v27 = vand.u32 4294901760, %v7028_v22  ;;  %v8036_v22 = vand.u32 4294901760, %v7106_v26  ;;  %v8042_v26 = vld [vmem:[#allocation13_spill] sm:$0xff] }
  0xc1   : > { %6050 = vmatpush3.bf16.msra.mxu1 %v8025_v40 }
  0xc2   : > { %6052 = vmatprep.subr.bf16.mxu1 %v7186_v49 }
  0xc3   : > { %6026 = vmatpush3.bf16.msra.mxu0 %v6025_v6  ;;  %v8031_v6 = vand.u32 4294901760, %v7030_v25  ;;  %v8037_v25 = vld [vmem:[#allocation10_spill] sm:$0xff] }
  0xc4   : > { %6028 = vmatprep.subr.bf16.mxu0 %v6027_v56 }
  0xc5   : > { %6054 = vmatpush3.bf16.msra.mxu1 %v7207_v4  ;;  %v6071_v56 = vpack.c.bf16 %v8031_v6, %v8030_v27 }
  0xc6   : > { %6056 = vmatprep.subr.bf16.mxu1 %v7239_v7 }
  0xc7   : > { %6030 = vmatpush3.bf16.msra.mxu0 %v6029_v31  ;;  %v6073_v31 = vpack.c.bf16 %v8034_v32, %v8033_v29 }
  0xc8   : > { %6032 = vmatprep.subr.bf16.mxu0 %v6031_v21  ;;  %v6075_v21 = vpack.c.bf16 %v8036_v22, %v8035_v52  ;;  %v2663_v22 = vld [vmem:[%s7832_s6] sm:$0xff] }
  0xc9   : > { %6058 = vmatpush3.bf16.msra.mxu1 %v7252_v42 }
  0xca   : > { %6060 = vmatprep.subr.bf16.mxu1 %v7384_v54 }
  0xcb   : > { %6034 = vmatpush3.bf16.msra.mxu0 %v6033_v0  ;;  %v8038_v0 = vand.u32 4294901760, %v7119_v38  ;;  %v8044_v38 = vand.u32 4294901760, %v7163_v12  ;;  %v8049_v12 = vand.u32 4294901760, %v8021_v19  ;;  %v8055_v19 = vand.u32 4294901760, %v7340_v28 }
  0xcc   : > { %6068 = vmatprep.subr.bf16.mxu0 %v6067_v46  ;;  %v6083_v46 = vpack.c.bf16 %v8046_v55, %v8045_v58 }
  0xcd   : > { %6062 = vmatpush3.bf16.msra.mxu1 %v7386_v61  ;;  %v6077_v47 = vpack.c.bf16 %v8039_v43, %v8038_v0 }
  0xce   : > { %1820 = vmatmul.mubr.f32.vlgmr.msra.gmra.mrb[8].mxu0 %v8032_v1  ;;  %6064 = vmatprep.subr.bf16.mxu1 %v7406_v17 }
  0xcf   : > { %6070 = vmatpush3.bf16.msra.mxu0 %v6069_v36  ;;  %2094 = vmatprep.mubr.f32.mxu0 %v8037_v25 }
  0xd0   : > { %6072 = vmatprep.subr.bf16.mxu0 %v6071_v56 }
  0xd1   : > { %6066 = vmatpush3.bf16.msra.mxu1 %v7415_v30 }
  0xd2   : > { %6100 = vmatprep.subr.bf16.mxu1 %v7057_v18  ;;  %v8043_v18 = vand.u32 4294901760, %v7161_v20  ;;  %v8050_v20 = vand.u32 4294901760, %v8022_v41  ;;  %v6093_v41 = vpack.c.bf16 %v8055_v19, %v1542_v50 }
  0xd3   : > { %6074 = vmatpush3.bf16.msra.mxu0 %v6073_v31 }
  0xd4   : > { %6076 = vmatprep.subr.bf16.mxu0 %v6075_v21  ;;  %1928 = vmatmul.mubr.f32.vlgmr.msra.gmra.mrb[8].mxu1 %v8042_v26  ;;  %v6081_v34 = vpack.c.bf16 %v8044_v38, %v8043_v18  ;;  %v6087_v16 = vpack.c.bf16 %v8050_v20, %v8049_v12 }
  0xd5   : > { %6102 = vmatpush3.bf16.msra.mxu1 %v7073_v53  ;;  %2198 = vmatprep.mubr.f32.mxu1 %v8037_v25  ;;  %v8047_v53 = vand.u32 4294901760, %v8019_v57  ;;  %v8054_v57 = vand.u32 4294901760, %v7306_v63  ;;  %v6361_v25 = vmov 0  }
  0xd6   : > { %6104 = vmatprep.subr.bf16.mxu1 %v8014_v14  ;;  %v8048_v14 = vand.u32 4294901760, %v8020_v51  ;;  %6283 = vset.pattern.permute.xlu0 %v6361_v25 }
  0xd7   : > { %6078 = vmatpush3.bf16.msra.mxu0 %v6077_v47  ;;  %6284 = vset.pattern.permute.xlu1 %v6361_v25  ;;  %v2670_v47 = vld [vmem:[%s7833_s7] sm:$0xff] }
  0xd8   : > { %6080 = vmatprep.subr.bf16.mxu0 %v6079_v59  ;;  %v6085_v11 = vpack.c.bf16 %v8048_v14, %v8047_v53  ;;  %2666 = vperm.xlu0 %6283, %v2663_v22   ;;  %v3144_v25 = vld [vmem:[%s7837_s11] sm:$0xf] }
  0xd9   : > { %6106 = vmatpush3.bf16.msra.mxu1 %v8017_v5  ;;  %v6089_v5 = vpack.c.bf16 %v8052_v44, %v8051_v3 }
  0xda   : > { %6108 = vmatprep.subr.bf16.mxu1 %v8018_v24  ;;  %v8053_v24 = vand.u32 4294901760, %v7293_v8 }
  0xdb   : > { %6082 = vmatpush3.bf16.msra.mxu0 %v6081_v34 }
  0xdc   : > { %6084 = vmatprep.subr.bf16.mxu0 %v6083_v46  ;;  %v6091_v51 = vpack.c.bf16 %v8054_v57, %v8053_v24  ;;  %2673 = vperm.xlu0 %6283, %v2670_v47  }
  0xdd   : > { %6110 = vmatpush3.bf16.msra.mxu1 %v8023_v2  ;;  %v6095_v2 = vpack.c.bf16 %v8057_v48, %v8056_v45 }
  0xde   : > { %6112 = vmatprep.subr.bf16.mxu1 %v8024_v9 }
  0xdf   : > { %6086 = vmatpush3.bf16.msra.mxu0 %v6085_v11 }
  0xe0   : > { %6088 = vmatprep.subr.bf16.mxu0 %v6087_v16 }
  0xe1   : > { %6114 = vmatpush3.bf16.msra.mxu1 %v8025_v40 }
  0xe2   : > { %6116 = vmatprep.subr.bf16.mxu1 %v7186_v49  ;;  %v6097_v49 = vpack.c.bf16 %v1563_v35, %v1556_v10 }
  0xe3   : > { %6090 = vmatpush3.bf16.msra.mxu0 %v6089_v5 }
  0xe4   : > { %6092 = vmatprep.subr.bf16.mxu0 %v6091_v51 }
  0xe5   : > { %6118 = vmatpush3.bf16.msra.mxu1 %v7207_v4 }
  0xe6   : > { %6120 = vmatprep.subr.bf16.mxu1 %v7239_v7 }
  0xe7   : > { %6094 = vmatpush3.bf16.msra.mxu0 %v6093_v41 }
  0xe8   : > { %6096 = vmatprep.subr.bf16.mxu0 %v6095_v2 }
  0xe9   : > { %6122 = vmatpush3.bf16.msra.mxu1 %v7252_v42 }
  0xea   : > { %6124 = vmatprep.subr.bf16.mxu1 %v7384_v54 }
  0xeb   : > { %6098 = vmatpush3.bf16.msra.mxu0 %v6097_v49 }
  0xec   : > { %5627 = vmatprep.subr.mxu0 %v6359_v33 }
  0xed   : > { %6126 = vmatpush3.bf16.msra.mxu1 %v7386_v61 }
  0xee   : > { %2096 = vmatmul.mubr.f32.vlgmr.msra.gmra.mrb[10].mxu0 %v6790_v13  ;;  %6128 = vmatprep.subr.bf16.mxu1 %v7406_v17 }
  0xef   : > { %5629 = vmatprep.mubr.msk.f32.mxu0 %vm6360_vm0, %v6359_v33 }
  0xf1   : > { %6130 = vmatpush3.bf16.msra.mxu1 %v7415_v30 }
  0xf2   : > { %5657 = vmatprep.subr.mxu1 %v6359_v33 }
  0xf4   : > { %2200 = vmatmul.mubr.f32.vlgmr.msra.gmra.mrb[10].mxu1 %v6790_v13  ;;  %v2208_v13 = vld [vmem:[%s7831_s5] sm:$0xff] }
  0xf5   : > { %5659 = vmatprep.mubr.msk.f32.mxu1 %vm6360_vm0, %v6359_v33  ;;  %v2211_v17 = vsel %vm2209_vm1, %v2208_v13, 0 }
  0xf6   : > { %v7566_v30 = vand.u32 4294901760, %v2211_v17 }
  0xf8   : > { %v7569_v27 = vsub.f32 %v2211_v17, %v7566_v30 }
  0xfa   : > { %v7572_v1 = vand.u32 4294901760, %v7569_v27 }
  0xfc   : > { %v2286_v52 = vsub.f32 %v7569_v27, %v7572_v1 }
  0xfe   : > { %v2287_v43 = vand.u32 4294901760, %v2286_v52 }
 0x121   : > { %v5191_v4 = vpop.f32.mrb[0].mxu0 }
 0x122   : > { %v5192_v7 = vpop.f32.mrb[1].mxu0 }
 0x123   : > { %v5193_v63 = vadd.f32 %v5192_v7, %v5191_v4 }
 0x127   : > { %v5226_v42 = vpop.f32.mrb[0].mxu1 }
 0x128   : > { %v5227_v8 = vpop.f32.mrb[1].mxu1 }
 0x129   : > { %v5228_v62 = vadd.f32 %v5227_v8, %v5226_v42 }
 0x12b   : > { %v789_v28 = vadd.f32 %v5228_v62, %v5193_v63 }
 0x141   : > { %v5261_v37 = vpop.f32.mrb[2].mxu0 }
 0x142   : > { %v5262_v15 = vpop.f32.mrb[3].mxu0 }
 0x143   : > { %v5263_v23 = vadd.f32 %v5262_v15, %v5261_v37  ;;  %v2206_v37 = vld [vmem:[%s7834_s8] sm:$0xf] }
 0x145   : > { %v927_v50 = vadd.f32 %v5263_v23, %v789_v28  ;;  %v2689_v23 = vsel %vm2687_vm3, %v2206_v37, 0 }
 0x147   : > { %v5296_v54 = vpop.f32.mrb[2].mxu1 }
 0x148   : > { %v5297_v61 = vpop.f32.mrb[3].mxu1 }
 0x149   : > { %v5298_v10 = vadd.f32 %v5297_v61, %v5296_v54 }
 0x14b   : > { %v1035_v35 = vadd.f32 %v5298_v10, %v927_v50  ;;  %v2757_v50 = vand.u32 4294901760, %v2689_v23 }
 0x14d   : > { %v2758_v13 = vsub.f32 %v2689_v23, %v2757_v50 }
 0x157   : > { %v2667_v15 = vpop.permute.xlu0 %2666 }
 0x15b   : > { %v2674_v61 = vpop.permute.xlu0 %2673 }
 0x161   : > { %v5331_v9 = vpop.f32.mrb[4].mxu0 }
 0x162   : > { %v5332_v40 = vpop.f32.mrb[5].mxu0 }
 0x163   : > { %v5333_v36 = vadd.f32 %v5332_v40, %v5331_v9  ;;  %v2759_v40 = vand.u32 4294901760, %v2758_v13 }
 0x165   : > { %v1203_v6 = vadd.f32 %v5333_v36, %v1035_v35 }
 0x167   : > { %v5366_v56 = vpop.f32.mrb[4].mxu1 }
 0x168   : > { %v5367_v29 = vpop.f32.mrb[5].mxu1 }
 0x169   : > { %v5368_v32 = vadd.f32 %v5367_v29, %v5366_v56  ;;  %v2207_v56 = vld [vmem:[%s7835_s9] sm:$0xf] }
 0x16a   : > { %2684 = vperm.xlu1 %6284, %v2207_v56   ;;  %v4563_v56 = vld [vmem:[%s7830_s4 + $0x18] sm:$0xff] }
 0x16b   : > { %v1307_v31 = vadd.f32 %v5368_v32, %v1203_v6 }
 0x16d   : > { %v1310_v21 = vmul.f32 0.0625, %v1307_v31 }
 0x16e   : > { %3603 = vperm.xlu1 %6284, %v3144_v25  }
 0x16f   : > { %v2215_v0 = vsel %vm2213_vm2, %v1310_v21, 0 }
 0x170   : > { %v2218_v39 = vand.u32 4294901760, %v2215_v0 }
 0x172   : > { %v2295_v60 = vsub.f32 %v2215_v0, %v2218_v39  ;;  %5628 = vmatpush3.msra.mxu0 %v2218_v39  ;;  %v3143_v0 = vld [vmem:[%s7836_s10] sm:$0xf] }
 0x173   : > { %5630 = vmatmul.mubr.f32.vlgmr.msra.gmra.mrb[12].mxu0 %v2287_v43  ;;  %5632 = vmatprep.subr.mxu0 %v6359_v33 }
 0x174   : > { %v2296_v59 = vand.u32 4294901760, %v2295_v60  ;;  %5634 = vmatprep.mubr.msk.f32.mxu0 %vm6360_vm0, %v6359_v33 }
 0x176   : > { %v2297_v26 = vsub.f32 %v2295_v60, %v2296_v59 }
 0x178   : > { %v2298_v18 = vand.u32 4294901760, %v2297_v26 }
 0x17a   : > { %5633 = vmatpush3.msra.mxu0 %v2298_v18 }
 0x17b   : > { %5635 = vmatmul.mubr.f32.vlgmr.msra.gmra.mrb[12].mxu0 %v7566_v30  ;;  %5637 = vmatprep.subr.mxu0 %v6359_v33 }
 0x17c   : > { %5638 = vmatpush3.msra.mxu0 %v2295_v60  ;;  %5639 = vmatprep.mubr.msk.f32.mxu0 %vm6360_vm0, %v6359_v33 }
 0x17d   : > { %5642 = vmatprep.subr.mxu0 %v6359_v33 }
 0x181   : > { %v5401_v38 = vpop.f32.mrb[6].mxu0 }
 0x182   : > { %v5402_v34 = vpop.f32.mrb[7].mxu0 }
 0x183   : > { %v5403_v58 = vadd.f32 %v5402_v34, %v5401_v38  ;;  %5640 = vmatmul.mubr.f32.vlgmr.msra.gmra.mrb[12].mxu0 %v7569_v27 }
 0x184   : > { %5643 = vmatpush3.msra.mxu0 %v2218_v39  ;;  %5644 = vmatprep.mubr.msk.f32.mxu0 %vm6360_vm0, %v6359_v33 }
 0x185   : > { %5647 = vmatprep.subr.mxu0 %v6359_v33 }
 0x187   : > { %v5436_v55 = vpop.f32.mrb[6].mxu1 }
 0x188   : > { %v5437_v46 = vpop.f32.mrb[7].mxu1 }
 0x189   : > { %v5438_v53 = vadd.f32 %v5437_v46, %v5436_v55 }
 0x18b   : > { %v1684_v14 = vadd.f32 %v5438_v53, %v5403_v58  ;;  %5645 = vmatmul.mubr.f32.vlgmr.msra.gmra.mrb[12].mxu0 %v7572_v1 }
 0x18c   : > { %5648 = vmatpush3.msra.mxu0 %v2296_v59  ;;  %5649 = vmatprep.mubr.msk.f32.mxu0 %vm6360_vm0, %v6359_v33 }
 0x18d   : > { %5652 = vmatprep.subr.mxu0 %v6359_v33 }
 0x193   : > { %5650 = vmatmul.mubr.f32.vlgmr.msra.gmra.mrb[12].mxu0 %v7566_v30 }
 0x194   : > { %5653 = vmatpush3.msra.mxu0 %v2218_v39  ;;  %5654 = vmatprep.mubr.msk.f32.mxu0 %vm6360_vm0, %v6359_v33 }
 0x195   : > { %5687 = vmatprep.subr.mxu0 %v6359_v33 }
 0x19b   : > { %5655 = vmatmul.mubr.f32.vlgmr.msra.gmra.mrb[12].mxu0 %v7566_v30 }
 0x19c   : > { %5689 = vmatprep.mubr.msk.f32.mxu0 %vm6360_vm0, %v6359_v33 }
 0x1a1   : > { %v5471_v11 = vpop.f32.mrb[8].mxu0 }
 0x1a2   : > { %v5472_v12 = vpop.f32.mrb[9].mxu0 }
 0x1a3   : > { %v5473_v20 = vadd.f32 %v5472_v12, %v5471_v11 }
 0x1a5   : > { %v1822_v16 = vadd.f32 %v5473_v20, %v1684_v14 }
 0x1a7   : > { %v5506_v3 = vpop.f32.mrb[8].mxu1 }
 0x1a8   : > { %v5507_v44 = vpop.f32.mrb[9].mxu1 }
 0x1a9   : > { %v5508_v5 = vadd.f32 %v5507_v44, %v5506_v3 }
 0x1ab   : > { %v1930_v24 = vadd.f32 %v5508_v5, %v1822_v16  ;;  %v4062_v5 = vld [vmem:[%s7829_s3 + $0x8] sm:$0xff] }
 0x1c1   : > { %v5541_v57 = vpop.f32.mrb[10].mxu0 }
 0x1c2   : > { %v5542_v51 = vpop.f32.mrb[11].mxu0 }
 0x1c3   : > { %v5543_v19 = vadd.f32 %v5542_v51, %v5541_v57  ;;  %v4061_v57 = vld [vmem:[%s7829_s3] sm:$0xff]  ;;  %v4069_v51 = vand.u32 4294901760, %v4062_v5 }
 0x1c5   : > { %v2098_v41 = vadd.f32 %v5543_v19, %v1930_v24  ;;  %v4064_v24 = vld [vmem:[%s7829_s3 + $0x18] sm:$0xff] }
 0x1c6   : > { %v4073_v19 = vand.u32 4294901760, %v4064_v24 }
 0x1c7   : > { %v5576_v45 = vpop.f32.mrb[10].mxu1 }
 0x1c8   : > { %v5577_v48 = vpop.f32.mrb[11].mxu1 }
 0x1c9   : > { %v5578_v2 = vadd.f32 %v5577_v48, %v5576_v45  ;;  %v4071_v45 = vand.u32 4294901760, %v4061_v57 }
 0x1cb   : > { %v2202_v49 = vadd.f32 %v5578_v2, %v2098_v41  ;;  %v4063_v41 = vld [vmem:[%s7829_s3 + $0x10] sm:$0xff]  ;;  %v7688_v2 = vpack.c.bf16 %v4073_v19, %v4069_v51 }
 0x1cc   : > { %v4075_v48 = vand.u32 4294901760, %v4063_v41 }
 0x1cd   : > { %v2205_v4 = vmul.f32 0.0625, %v2202_v49  ;;  %v7690_v49 = vsub.f32 %v4061_v57, %v4071_v45 }
 0x1cf   : > { %v3146_v7 = vsel %vm2213_vm2, %v2205_v4, 0  ;;  %v7692_v4 = vpack.c.bf16 %v4075_v48, %v4071_v45 }
 0x1d0   : > { %v3149_v63 = vand.u32 4294901760, %v3146_v7 }
 0x1d2   : > { %v3226_v42 = vsub.f32 %v3146_v7, %v3149_v63  ;;  %5688 = vmatpush3.msra.mxu0 %v3149_v63  ;;  %v7694_v7 = vsub.f32 %v4063_v41, %v4075_v48 }
 0x1d3   : > { %5690 = vmatmul.mubr.f32.vlgmr.msra.gmra.mrb[14].mxu0 %v2287_v43  ;;  %5692 = vmatprep.subr.mxu0 %v6359_v33  ;;  %v3607_v43 = vsel %vm2687_vm3, %v3143_v0, 0 }
 0x1d4   : > { %v3227_v8 = vand.u32 4294901760, %v3226_v42  ;;  %5694 = vmatprep.mubr.msk.f32.mxu0 %vm6360_vm0, %v6359_v33  ;;  %v3675_v47 = vand.u32 4294901760, %v3607_v43  ;;  %v4169_v37 = vand.u32 4294901760, %v7694_v7 }
 0x1d6   : > { %v3228_v62 = vsub.f32 %v3226_v42, %v3227_v8  ;;  %v3676_v26 = vsub.f32 %v3607_v43, %v3675_v47 }
 0x1d8   : > { %v3229_v28 = vand.u32 4294901760, %v3228_v62  ;;  %v3677_v34 = vand.u32 4294901760, %v3676_v26 }
 0x1da   : > { %5693 = vmatpush3.msra.mxu0 %v3229_v28  ;;  %v3678_v46 = vsub.f32 %v3676_v26, %v3677_v34  ;;  %v4157_v28 = vand.u32 4294901760, %v7690_v49 }
 0x1db   : > { %5695 = vmatmul.mubr.f32.vlgmr.msra.gmra.mrb[14].mxu0 %v7566_v30  ;;  %5697 = vmatprep.subr.mxu0 %v6359_v33 }
 0x1dc   : > { %5698 = vmatpush3.msra.mxu0 %v3226_v42  ;;  %5699 = vmatprep.mubr.msk.f32.mxu0 %vm6360_vm0, %v6359_v33  ;;  %v3679_v11 = vand.u32 4294901760, %v3678_v46  ;;  %v7700_v42 = vsub.f32 %v4064_v24, %v4073_v19 }
 0x1dd   : > { %5702 = vmatprep.subr.mxu0 %v6359_v33 }
 0x1de   : > { %v4163_v62 = vand.u32 4294901760, %v7700_v42 }
 0x1e0   : > { %v4164_v23 = vsub.f32 %v7700_v42, %v4163_v62 }
 0x1e3   : > { %5700 = vmatmul.mubr.f32.vlgmr.msra.gmra.mrb[14].mxu0 %v7569_v27  ;;  %v2760_v27 = vsub.f32 %v2758_v13, %v2759_v40 }
 0x1e4   : > { %5703 = vmatpush3.msra.mxu0 %v3149_v63  ;;  %5704 = vmatprep.mubr.msk.f32.mxu0 %vm6360_vm0, %v6359_v33 }
 0x1e5   : > { %5707 = vmatprep.subr.mxu0 %v6359_v33  ;;  %v2761_v29 = vand.u32 4294901760, %v2760_v27  ;;  %v7716_v27 = vpack.c.bf16 %v4169_v37, %v4157_v28 }
 0x1eb   : > { %5705 = vmatmul.mubr.f32.vlgmr.msra.gmra.mrb[14].mxu0 %v7572_v1 }
 0x1ec   : > { %5708 = vmatpush3.msra.mxu0 %v3227_v8  ;;  %5709 = vmatprep.mubr.msk.f32.mxu0 %vm6360_vm0, %v6359_v33 }
 0x1ed   : > { %5712 = vmatprep.subr.mxu0 %v6359_v33 }
 0x1f3   : > { %5710 = vmatmul.mubr.f32.vlgmr.msra.gmra.mrb[14].mxu0 %v7566_v30 }
 0x1f4   : > { %5713 = vmatpush3.msra.mxu0 %v3149_v63  ;;  %5714 = vmatprep.mubr.msk.f32.mxu0 %vm6360_vm0, %v6359_v33  ;;  %v7698_v63 = vsub.f32 %v4062_v5, %v4069_v51 }
 0x1f5   : > { %6132 = vmatprep.subr.bf16.mxu0 %v7688_v2 }
 0x1f6   : > { %v4151_v8 = vand.u32 4294901760, %v7698_v63 }
 0x1fb   : > { %5715 = vmatmul.mubr.f32.vlgmr.msra.gmra.mrb[14].mxu0 %v7566_v30 }
 0x1fc   : > { %4137 = vmatprep.mubr.f32.mxu0 %v6359_v33  ;;  %6134 = vmatpush1.bf16.msra.mxu0 %v7692_v4 }
 0x26e   : > { %v2659_v54 = vpop.f32.mrb[12].mxu0 }
 0x26f   : > { %v2669_v10 = vmul.f32 %v2667_v15, %v2659_v54  ;;  %v5656_v35 = vpop.f32.mrb[13].mxu0  ;;  %v4170_v54 = vsub.f32 %v7694_v7, %v4169_v37 }
 0x271   : > { %v2676_v17 = vadd.f32 %v2674_v61, %v2669_v10  ;;  %v4165_v10 = vand.u32 4294901760, %v4164_v23 }
 0x273   : > { %v2677_v9 = vadd.f32 3.0, %v2676_v17 }
 0x275   : > { %v2678_v30 = vmax.f32 %v2677_v9, 0.0 }
 0x277   : > { %v2679_v36 = vmin.f32 %v2678_v30, 6.0  ;;  %v6141_v30 = vpack.c.bf16 %v7694_v7, %v7690_v49 }
 0x279   : > { %v2680_v6 = vmul.f32 %v2679_v36, %v2676_v17  ;;  %v7714_v36 = vpack.c.bf16 %v4163_v62, %v4151_v8 }
 0x27b   : > { %v2681_v1 = vmul.f32 0.16666667, %v2680_v6  ;;  %v4561_v6 = vld [vmem:[%s7830_s4 + $0x8] sm:$0xff] }
 0x27d   : > { %v2692_v32 = vand.u32 4294901760, %v2681_v1 }
 0x27f   : > { %v2769_v31 = vsub.f32 %v2681_v1, %v2692_v32  ;;  %5658 = vmatpush3.msra.mxu1 %v2692_v32  ;;  %v4560_v1 = vld [vmem:[%s7830_s4] sm:$0xff] }
 0x280   : > { %5660 = vmatmul.mubr.f32.vlgmr.msra.gmra.mrb[12].mxu1 %v2761_v29  ;;  %5662 = vmatprep.subr.mxu1 %v6359_v33  ;;  %v4567_v29 = vand.u32 4294901760, %v4561_v6 }
 0x281   : > { %v2770_v52 = vand.u32 4294901760, %v2769_v31  ;;  %5664 = vmatprep.mubr.msk.f32.mxu1 %vm6360_vm0, %v6359_v33 }
 0x283   : > { %v2771_v22 = vsub.f32 %v2769_v31, %v2770_v52 }
 0x285   : > { %v2772_v21 = vand.u32 4294901760, %v2771_v22 }
 0x287   : > { %5663 = vmatpush3.msra.mxu1 %v2772_v21 }
 0x288   : > { %5665 = vmatmul.mubr.f32.vlgmr.msra.gmra.mrb[12].mxu1 %v2757_v50  ;;  %5667 = vmatprep.subr.mxu1 %v6359_v33 }
 0x289   : > { %5668 = vmatpush3.msra.mxu1 %v2769_v31  ;;  %5669 = vmatprep.mubr.msk.f32.mxu1 %vm6360_vm0, %v6359_v33  ;;  %v4562_v31 = vld [vmem:[%s7830_s4 + $0x10] sm:$0xff] }
 0x28a   : > { %5672 = vmatprep.subr.mxu1 %v6359_v33  ;;  %v4573_v22 = vand.u32 4294901760, %v4562_v31 }
 0x28c   : > { %v7736_v43 = vsub.f32 %v4562_v31, %v4573_v22 }
 0x28e   : > { %v4667_v46 = vand.u32 4294901760, %v7736_v43 }
 0x290   : > { %5670 = vmatmul.mubr.f32.vlgmr.msra.gmra.mrb[12].mxu1 %v2758_v13  ;;  %v4171_v13 = vand.u32 4294901760, %v4170_v54 }
 0x291   : > { %5673 = vmatpush3.msra.mxu1 %v2692_v32  ;;  %5674 = vmatprep.mubr.msk.f32.mxu1 %vm6360_vm0, %v6359_v33 }
 0x292   : > { %5677 = vmatprep.subr.mxu1 %v6359_v33 }
 0x298   : > { %5675 = vmatmul.mubr.f32.vlgmr.msra.gmra.mrb[12].mxu1 %v2759_v40  ;;  %v6139_v40 = vpack.c.bf16 %v7700_v42, %v7698_v63 }
 0x299   : > { %5678 = vmatpush3.msra.mxu1 %v2770_v52  ;;  %5679 = vmatprep.mubr.msk.f32.mxu1 %vm6360_vm0, %v6359_v33  ;;  %v4569_v52 = vand.u32 4294901760, %v4560_v1 }
 0x29a   : > { %5682 = vmatprep.subr.mxu1 %v6359_v33 }
 0x29b   : > { %v7732_v25 = vsub.f32 %v4560_v1, %v4569_v52  ;;  %v7734_v0 = vpack.c.bf16 %v4573_v22, %v4569_v52  ;;  %v6294_v1 = vld [vmem:[%s6757_s28] sm:$0xff]  ;;  %s6299_s28 = sshll.u32 %s6362_s25, 4  ;;  %s6300_s28 = int_to_ptr.vmem [resolvable:$false] %s6299_s28 }
 0x29c   : > { %s6301_s19 = scalar_lea.vmem %s6300_s28, 256  ;;  %p6302_p0 = scmp.lt.s32.totalorder %s7786_s26, %s6300_s28 }
 0x29d   : > { %v6165_v41 = vpack.c.bf16 %v7736_v43, %v7732_v25  ;;  %p6303_p1 = scmp.lt.s32.totalorder %s6301_s19, %s6295_s0 }
 0x29f   : > { %p6304_p2 = por %p6303_p1, %p6302_p0 }
 0x2a0   : > { %5680 = vmatmul.mubr.f32.vlgmr.msra.gmra.mrb[12].mxu1 %v2757_v50 }
 0x2a1   : > { %5683 = vmatpush3.msra.mxu1 %v2692_v32  ;;  %5684 = vmatprep.mubr.msk.f32.mxu1 %vm6360_vm0, %v6359_v33  ;;  %v4571_v32 = vand.u32 4294901760, %v4563_v56  ;;  %p6305_p3 = pnand %p6304_p2, %p6298_p13 }
 0x2a2   : > { %5717 = vmatprep.subr.mxu1 %v6359_v33 }
 0x2a3   : > { %v7730_v21 = vpack.c.bf16 %v4571_v32, %v4567_v29 }
 0x2a8   : > { %5685 = vmatmul.mubr.f32.vlgmr.msra.gmra.mrb[12].mxu1 %v2757_v50  ;;  %v4158_v50 = vsub.f32 %v7690_v49, %v4157_v28 }
 0x2a9   : > { %5719 = vmatprep.mubr.msk.f32.mxu1 %vm6360_vm0, %v6359_v33 }
 0x2aa   : > { %v4159_v35 = vand.u32 4294901760, %v4158_v50 }
 0x2ac   : > { %v6137_v9 = vpack.c.bf16 %v4171_v13, %v4159_v35 }
 0x2ce   : > { %v3590_v39 = vpop.f32.mrb[14].mxu0 }
 0x2cf   : > { %v3594_v60 = vmul.f32 %v3590_v39, %v2667_v15  ;;  %v5716_v59 = vpop.f32.mrb[15].mxu0  ;;  %v4152_v15 = vsub.f32 %v7698_v63, %v4151_v8 }
 0x2d1   : > { %v3595_v18 = vadd.f32 %v3594_v60, %v2674_v61  ;;  %v4153_v61 = vand.u32 4294901760, %v4152_v15 }
 0x2d3   : > { %v3596_v38 = vadd.f32 3.0, %v3595_v18  ;;  %v6135_v17 = vpack.c.bf16 %v4165_v10, %v4153_v61 }
 0x2d5   : > { %v3597_v58 = vmax.f32 %v3596_v38, 0.0  ;;  %6136 = vmatprep.subr.bf16.mxu0 %v6135_v17 }
 0x2d7   : > { %v3598_v55 = vmin.f32 %v3597_v58, 6.0 }
 0x2d9   : > { %v3599_v53 = vmul.f32 %v3598_v55, %v3595_v18  ;;  %v7742_v18 = vsub.f32 %v4563_v56, %v4571_v32  ;;  %v4655_v55 = vand.u32 4294901760, %v7732_v25 }
 0x2db   : > { %v3600_v14 = vmul.f32 0.16666667, %v3599_v53  ;;  %v4661_v58 = vand.u32 4294901760, %v7742_v18  ;;  %v6173_v42 = vpack.c.bf16 %v4667_v46, %v4655_v55 }
 0x2dd   : > { %v3610_v12 = vand.u32 4294901760, %v3600_v14 }
 0x2df   : > { %v3687_v20 = vsub.f32 %v3600_v14, %v3610_v12  ;;  %5718 = vmatpush3.msra.mxu1 %v3610_v12  ;;  %v4662_v14 = vsub.f32 %v7742_v18, %v4661_v58 }
 0x2e0   : > { %5720 = vmatmul.mubr.f32.vlgmr.msra.gmra.mrb[14].mxu1 %v3679_v11  ;;  %5722 = vmatprep.subr.mxu1 %v6359_v33  ;;  %v4656_v11 = vsub.f32 %v7732_v25, %v4655_v55 }
 0x2e1   : > { %v3688_v16 = vand.u32 4294901760, %v3687_v20  ;;  %5724 = vmatprep.mubr.msk.f32.mxu1 %vm6360_vm0, %v6359_v33 }
 0x2e3   : > { %v3689_v3 = vsub.f32 %v3687_v20, %v3688_v16 }
 0x2e5   : > { %v3690_v44 = vand.u32 4294901760, %v3689_v3  ;;  %v4657_v3 = vand.u32 4294901760, %v4656_v11 }
 0x2e7   : > { %5723 = vmatpush3.msra.mxu1 %v3690_v44 }
 0x2e8   : > { %5725 = vmatmul.mubr.f32.vlgmr.msra.gmra.mrb[14].mxu1 %v3675_v47  ;;  %5727 = vmatprep.subr.mxu1 %v6359_v33 }
 0x2e9   : > { %5728 = vmatpush3.msra.mxu1 %v3687_v20  ;;  %5729 = vmatprep.mubr.msk.f32.mxu1 %vm6360_vm0, %v6359_v33 }
 0x2ea   : > { %5732 = vmatprep.subr.mxu1 %v6359_v33 }
 0x2f0   : > { %5730 = vmatmul.mubr.f32.vlgmr.msra.gmra.mrb[14].mxu1 %v3676_v26  ;;  %v7740_v26 = vsub.f32 %v4561_v6, %v4567_v29 }
 0x2f1   : > { %5733 = vmatpush3.msra.mxu1 %v3610_v12  ;;  %5734 = vmatprep.mubr.msk.f32.mxu1 %vm6360_vm0, %v6359_v33 }
 0x2f2   : > { %5737 = vmatprep.subr.mxu1 %v6359_v33  ;;  %v6163_v19 = vpack.c.bf16 %v7742_v18, %v7740_v26 }
 0x2f8   : > { %5735 = vmatmul.mubr.f32.vlgmr.msra.gmra.mrb[14].mxu1 %v3677_v34  ;;  %v4649_v34 = vand.u32 4294901760, %v7740_v26 }
 0x2f9   : > { %5738 = vmatpush3.msra.mxu1 %v3688_v16  ;;  %5739 = vmatprep.mubr.msk.f32.mxu1 %vm6360_vm0, %v6359_v33  ;;  %v4663_v16 = vand.u32 4294901760, %v4662_v14 }
 0x2fa   : > { %5742 = vmatprep.subr.mxu1 %v6359_v33  ;;  %v4650_v53 = vsub.f32 %v7740_v26, %v4649_v34  ;;  %v6171_v63 = vpack.c.bf16 %v4661_v58, %v4649_v34 }
 0x2fc   : > { %v4651_v20 = vand.u32 4294901760, %v4650_v53 }
 0x2fe   : > { %v6159_v5 = vpack.c.bf16 %v4663_v16, %v4651_v20 }
 0x300   : > { %5740 = vmatmul.mubr.f32.vlgmr.msra.gmra.mrb[14].mxu1 %v3675_v47 }
 0x301   : > { %5743 = vmatpush3.msra.mxu1 %v3610_v12  ;;  %5744 = vmatprep.mubr.msk.f32.mxu1 %vm6360_vm0, %v6359_v33  ;;  %v4668_v12 = vsub.f32 %v7736_v43, %v4667_v46 }
 0x302   : > { %6156 = vmatprep.subr.bf16.mxu1 %v7730_v21 }
 0x303   : > { %v4669_v44 = vand.u32 4294901760, %v4668_v12 }
 0x305   : > { %v6161_v24 = vpack.c.bf16 %v4669_v44, %v4657_v3 }
 0x308   : > { %5745 = vmatmul.mubr.f32.vlgmr.msra.gmra.mrb[14].mxu1 %v3675_v47  ;;  %v2685_v47 = vpop.permute.xlu1 %2684 }
 0x309   : > { %4635 = vmatprep.mubr.f32.mxu1 %v6359_v33  ;;  %6158 = vmatpush1.bf16.msra.mxu1 %v7734_v0 }
 0x30a   : > { %6160 = vmatprep.subr.bf16.mxu1 %v6159_v5 }
 0x30c   : > { %v3604_v37 = vpop.permute.xlu1 %3603 }
 0x37b   : > { %v3133_v39 = vpop.f32.mrb[12].mxu1 }
 0x37c   : > { %v6179_v60 = vadd.f32 %v3133_v39, %v2685_v47  ;;  %v5686_v59 = vpop.f32.mrb[13].mxu1 }
 0x37e   : > { %v5150_v38 = vmul.f32 -1.442695, %v6179_v60 }
 0x380   : > { %6286 = vpow2.f32 %v5150_v38 }
 0x38a   : > { %v6287_v57 = vpop.eup %6286 }
 0x38b   : > { %v3140_v51 = vadd.f32 1.0, %v6287_v57 }
 0x38d   : > { %6288 = vrcp.f32 %v3140_v51 }
 0x397   : > { %v6289_v45 = vpop.eup %6288 }
 0x398   : > { %v4067_v48 = vsel %vm4065_vm4, %v6289_v45, 0 }
 0x399   : > { %v4138_v49 = vand.u32 4294901760, %v4067_v48 }
 0x39b   : > { %v4139_v7 = vsub.f32 %v4067_v48, %v4138_v49 }
 0x39d   : > { %v4140_v8 = vand.u32 4294901760, %v4139_v7 }
 0x39f   : > { %v4141_v62 = vsub.f32 %v4139_v7, %v4140_v8 }
 0x3a1   : > { %v4142_v28 = vand.u32 4294901760, %v4141_v62 }
 0x3a3   : > { %4143 = vmatmul.mubr.f32.vlgmr.msra.gmra.mrb[16].mxu0 %v4142_v28 }
 0x3a4   : > { %6138 = vmatpush1.bf16.msra.mxu0 %v6137_v9  ;;  %4233 = vmatprep.mubr.f32.mxu0 %v6359_v33 }
 0x3a5   : > { %6140 = vmatprep.subr.bf16.mxu0 %v6139_v40 }
 0x3ab   : > { %4235 = vmatmul.mubr.f32.vlgmr.msra.gmra.mrb[16].mxu0 %v4138_v49 }
 0x3ac   : > { %6142 = vmatpush1.bf16.msra.mxu0 %v6141_v30  ;;  %4313 = vmatprep.mubr.f32.mxu0 %v6359_v33 }
 0x3ad   : > { %6144 = vmatprep.subr.bf16.mxu0 %v7688_v2 }
 0x3b3   : > { %4316 = vmatmul.mubr.f32.vlgmr.msra.gmra.mrb[16].mxu0 %v4139_v7 }
 0x3b4   : > { %6146 = vmatpush1.bf16.msra.mxu0 %v7692_v4  ;;  %4390 = vmatprep.mubr.f32.mxu0 %v6359_v33 }
 0x3b5   : > { %6148 = vmatprep.subr.bf16.mxu0 %v7714_v36 }
 0x3bb   : > { %4394 = vmatmul.mubr.f32.vlgmr.msra.gmra.mrb[16].mxu0 %v4140_v8 }
 0x3bc   : > { %6150 = vmatpush1.bf16.msra.mxu0 %v7716_v27  ;;  %4476 = vmatprep.mubr.f32.mxu0 %v6359_v33 }
 0x3bd   : > { %6152 = vmatprep.subr.bf16.mxu0 %v7688_v2 }
 0x3c3   : > { %4478 = vmatmul.mubr.f32.vlgmr.msra.gmra.mrb[16].mxu0 %v4138_v49 }
 0x3c4   : > { %6154 = vmatpush1.bf16.msra.mxu0 %v7692_v4  ;;  %4552 = vmatprep.mubr.f32.mxu0 %v6359_v33 }
 0x3cb   : > { %4554 = vmatmul.mubr.f32.vlgmr.msra.gmra.mrb[16].mxu0 %v4138_v49 }
 0x3db   : > { %v4051_v15 = vpop.f32.mrb[14].mxu1 }
 0x3dc   : > { %v6180_v23 = vadd.f32 %v4051_v15, %v3604_v37  ;;  %v5746_v50 = vpop.f32.mrb[15].mxu1 }
 0x3de   : > { %v5151_v54 = vmul.f32 -1.442695, %v6180_v23 }
 0x3e0   : > { %6290 = vpow2.f32 %v5151_v54 }
 0x3ea   : > { %v6291_v61 = vpop.eup %6290 }
 0x3eb   : > { %v4058_v10 = vadd.f32 1.0, %v6291_v61 }
 0x3ed   : > { %6292 = vrcp.f32 %v4058_v10 }
 0x3f7   : > { %v6293_v35 = vpop.eup %6292 }
 0x3f8   : > { %v4565_v13 = vsel %vm4065_vm4, %v6293_v35, 0 }
 0x3f9   : > { %v4636_v17 = vand.u32 4294901760, %v4565_v13 }
 0x3fb   : > { %v4637_v2 = vsub.f32 %v4565_v13, %v4636_v17 }
 0x3fd   : > { %v4638_v9 = vand.u32 4294901760, %v4637_v2 }
 0x3ff   : > { %v4639_v40 = vsub.f32 %v4637_v2, %v4638_v9 }
 0x401   : > { %v4640_v4 = vand.u32 4294901760, %v4639_v40 }
 0x403   : > { %4641 = vmatmul.mubr.f32.vlgmr.msra.gmra.mrb[16].mxu1 %v4640_v4 }
 0x404   : > { %6162 = vmatpush1.bf16.msra.mxu1 %v6161_v24  ;;  %4731 = vmatprep.mubr.f32.mxu1 %v6359_v33 }
 0x405   : > { %6164 = vmatprep.subr.bf16.mxu1 %v6163_v19 }
 0x40b   : > { %4733 = vmatmul.mubr.f32.vlgmr.msra.gmra.mrb[16].mxu1 %v4636_v17 }
 0x40c   : > { %6166 = vmatpush1.bf16.msra.mxu1 %v6165_v41  ;;  %4811 = vmatprep.mubr.f32.mxu1 %v6359_v33 }
 0x40d   : > { %6168 = vmatprep.subr.bf16.mxu1 %v7730_v21 }
 0x413   : > { %4814 = vmatmul.mubr.f32.vlgmr.msra.gmra.mrb[16].mxu1 %v4637_v2 }
 0x414   : > { %6170 = vmatpush1.bf16.msra.mxu1 %v7734_v0  ;;  %4888 = vmatprep.mubr.f32.mxu1 %v6359_v33 }
 0x415   : > { %6172 = vmatprep.subr.bf16.mxu1 %v6171_v63 }
 0x41b   : > { %4892 = vmatmul.mubr.f32.vlgmr.msra.gmra.mrb[16].mxu1 %v4638_v9 }
 0x41c   : > { %6174 = vmatpush1.bf16.msra.mxu1 %v6173_v42  ;;  %4974 = vmatprep.mubr.f32.mxu1 %v6359_v33 }
 0x41d   : > { %6176 = vmatprep.subr.bf16.mxu1 %v7730_v21 }
 0x423   : > { %4976 = vmatmul.mubr.f32.vlgmr.msra.gmra.mrb[16].mxu1 %v4636_v17 }
 0x424   : > { %6178 = vmatpush1.bf16.msra.mxu1 %v7734_v0  ;;  %5050 = vmatprep.mubr.f32.mxu1 %v6359_v33 }
 0x42b   : > { %5052 = vmatmul.mubr.f32.vlgmr.msra.gmra.mrb[16].mxu1 %v4636_v17 }
 0x49e   : > { %v4555_v30 = vpop.f32.mrb[16].mxu0 }
 0x49f   : > { %v4557_v36 = vpop.f32.mrb[17].mxu0 }
 0x4a0   : > { %v5060_v27 = vcombine.low %v4555_v30, %v4557_v36 }
 0x4a2   : > { %v5062_v29 = vmul.f32 %v6294_v1, %v5060_v27 }
 0x4fe   : > { %v5053_v6 = vpop.f32.mrb[16].mxu1 }
 0x4ff   : > { %v5055_v56 = vpop.f32.mrb[17].mxu1 }
 0x500   : > { %v5065_v32 = vcombine.low %v5053_v6, %v5055_v56 }
 0x502   : > { %v5067_v31 = vmul.f32 %v5065_v32, %v5062_v29 }
 0x504   : > { %5068 = vst [vmem:[%s406_s30] sm:$0xff] %v5067_v31 }
 0x505   : > { %6308 = shalt.err (!%p6305_p3)
}
 0x506   : > { %s6309_s18 = scalar_lea.hbm %s7784_s16, 128  ;;  %s6313_s29 = scalar_lea.hbm %s7838_s12, 256 }
 0x507   : > { %p6310_p4 = scmp.ne.s32.totalorder %s7784_s16, %s6309_s18  ;;  %p6314_p9 = scmp.lt.u32.totalorder %s7784_s16, %s7838_s12 }
 0x508   : > { %p6315_p10 = scmp.lt.u32.totalorder %s6313_s29, %s6309_s18  ;;  %p6317_p12 = scmp.lt.u32.totalorder %s6309_s18, %s7784_s16 }
 0x509   : > { %p6311_p7 = pnand %p6310_p4, %p6466_p5 }
 0x50a   : > { %p6316_p11 = por %p6315_p10, %p6314_p9 }
 0x50b   : > { %p6312_p8 = pneg %p6311_p7 }
 0x50c   : > { %p6318_p13 = por %p6317_p12, %p6316_p11 }
 0x50e   : > { %p6319_p0 = pnand %p6318_p13, %p6312_p8 }
 0x510   : > { %6322 = shalt.err (!%p6319_p0)
}
 0x511   : > { %6241 = dma.vmem_to_hbm [thread:$0]  (%p6466_p5), %s7786_s26, 128, %s7784_s16, %s5070_s17  }
 0x512 PF: > { %p6247_p1 = scmp.ge.s32.totalorder %s6357_s24, 2  ;;  %s5096_s0 = sand.u32 1, %s6345_s21  }
 0x513   : > { %s5097_s28 = scalar_lea.sflag [#allocation3], %s5096_s0 }
 0x514   : > { %p6244_p2 = pnand %p6247_p1, %p6470_p6 }
 0x516   : > { %6340 = dma.done.wait (!%p6244_p2), %s5097_s28, 128  }
 0x517   : > { %6342 = vsyncadd (!%p6244_p2), %s5097_s28, 4294967168  ;;  %s8058_s19 = sld [smem:[#allocation5_spill]]  ;;  %p22_p3 = scmp.ge.s32.totalorder %s6453_s27, 4  }
 0x518   : > { %s8059_s21 = smov %s6349_s22  ;;  %s8060_s22 = smov %s6353_s23 }
 0x519   : > { %s8062_s24 = smov %s6453_s27  ;;  %24 = sbr.rel (!%p22_p3) target bundleno = 5 (0x5), region = 103 }
 0x51d   : > { %s8061_s23 = smov %s8058_s19 }
 0x520   :  { %5102 = vsyncpa [#allocation3], 1 }
 0x521   :  { %5104 = vsyncpa [#allocation3 + $0x1], 1 }

</bundles_post_ra>
